<compile_context>
chip_gen: v6e
topology: v6e:2x2x1
jax: 0.10.0
libtpu: 0.0.40
codegen_flags: <defaults>
</compile_context>

<pallas_src>
import functools

import jax
import jax.numpy as jnp
from jax import lax
from jax.experimental import pallas as pl
from jax.experimental.pallas import tpu as pltpu


# --------------------------------------------------------------------------
# Fused kernel: 3 LSTM layers (gate order [i, f, g, o], PyTorch) + MLP head.
# gx1_ref      : (T*Bp, 4H)  layer-1 input projection + bias (time-major, batch padded)
# whh{1,2,3}   : (H, 4H)     recurrent weights (transposed)
# wih{2,3}     : (H, 4H)     input weights of layers 2/3 (transposed)
# bias{2,3}    : (1, 4H)     b_ih + b_hh of layers 2/3
# w1/bh1       : (H, M),(1,M)   MLP layer 1 with BatchNorm folded in
# w2/bh2       : (M, M),(1,M)   MLP layer 2
# w3/bh3       : (M, 1),(1,1)   output layer
# Scratch: gx_scr (T*Bp, 4H) reused for layers 2/3 projections, y_scr (T*Bp, H) layer outputs.
# --------------------------------------------------------------------------
def _fused_lstm_kernel(gx1_ref, whh1_ref,
                       wih2_ref, bias2_ref, whh2_ref,
                       wih3_ref, bias3_ref, whh3_ref,
                       w1_ref, bh1_ref, w2_ref, bh2_ref, w3_ref, bh3_ref,
                       out_ref,
                       gx_scr, y_scr,
                       *, T, Bp, H):
    f32 = jnp.float32

    def run_layer(gx_ref, whh_ref, write_y):
        # Serial recurrence: only h_prev @ W_hh^T is on the critical path; the
        # input projection (incl. bias) was precomputed into gx_ref.
        h = jnp.zeros((Bp, H), f32)
        c = jnp.zeros((Bp, H), f32)
        w_hh = whh_ref[...]                                   # (H, 4H), loaded once
        for t in range(T):                                    # static unroll (T is small)
            row = t * Bp                                      # static, 8-aligned
            gates = gx_ref[row:row + Bp, :] + jnp.dot(
                h, w_hh, preferred_element_type=f32)          # (Bp, 4H)
            i_g = jax.nn.sigmoid(gates[:, 0 * H:1 * H])
            f_g = jax.nn.sigmoid(gates[:, 1 * H:2 * H])
            g_g = jnp.tanh(gates[:, 2 * H:3 * H])
            o_g = jax.nn.sigmoid(gates[:, 3 * H:4 * H])
            c = f_g * c + i_g * g_g
            h = o_g * jnp.tanh(c)
            if write_y:
                y_scr[row:row + Bp, :] = h
        return h

    # ---- LSTM layer 1 (input projection was computed in the wrapper) ----
    run_layer(gx1_ref, whh1_ref, write_y=True)

    # ---- LSTM layer 2: hoist input projection as one (T*Bp,H)@(H,4H) matmul ----
    gx_scr[...] = (jnp.dot(y_scr[...], wih2_ref[...], preferred_element_type=f32)
                   + bias2_ref[...])
    run_layer(gx_scr, whh2_ref, write_y=True)

    # ---- LSTM layer 3: only the final hidden state is needed ----
    gx_scr[...] = (jnp.dot(y_scr[...], wih3_ref[...], preferred_element_type=f32)
                   + bias3_ref[...])
    h_last = run_layer(gx_scr, whh3_ref, write_y=False)       # (Bp, H)

    # ---- Head: BatchNorm (eval) folded into w1/bh1; Dropout = identity in eval ----
    h1 = jnp.maximum(
        jnp.dot(h_last, w1_ref[...], preferred_element_type=f32) + bh1_ref[...], 0.0)
    h2 = jnp.maximum(
        jnp.dot(h1, w2_ref[...], preferred_element_type=f32) + bh2_ref[...], 0.0)
    out_ref[...] = (
        jnp.dot(h2, w3_ref[...], preferred_element_type=f32) + bh3_ref[...])


# --------------------------------------------------------------------------
# Wrapper: parameter prep (transposes, bias folding, BN folding, layer-1
# input projection, batch padding) + single pallas_call.
# --------------------------------------------------------------------------
@jax.jit
def lstm_model_forward(params, x_btd):
    # x_btd: (B, T, D) batch_first, like the PyTorch module.
    x = x_btd.astype(jnp.float32)
    B, T, D = x.shape
    l1, l2, l3 = params["lstm"]
    H = l1["w_hh"].shape[1]                       # w_hh: (4H, H)
    M = params["mlp1"]["w"].shape[0]              # (M, H)
    Bp = ((B + 7) // 8) * 8                       # pad batch to full sublanes

    # Layer-1 input projection for ALL timesteps (one matmul, absorbs the
    # batch_first -> time-major relayout). Result rows are ordered [t, b].
    bias1 = l1["b_ih"] + l1["b_hh"]
    gx1 = jnp.einsum("btd,gd->tbg", x, l1["w_ih"]) + bias1      # (T, B, 4H)
    gx1 = jnp.pad(gx1, ((0, 0), (0, Bp - B), (0, 0))).reshape(T * Bp, 4 * H)

    # Fold BatchNorm1d (eval, running stats) into the first Linear.
    eps = 1e-5
    bn = params["bn"]
    scale = bn["gamma"] * lax.rsqrt(bn["var"] + eps)            # (H,)
    shift = bn["beta"] - bn["mean"] * scale                     # (H,)
    w1 = params["mlp1"]["w"]                                    # (M, H)
    w1p = (w1 * scale[None, :]).T                               # (H, M)
    b1p = params["mlp1"]["b"] + w1 @ shift                      # (M,)

    args = (
        gx1,
        l1["w_hh"].T,                                                   # (H, 4H)
        l2["w_ih"].T, (l2["b_ih"] + l2["b_hh"]).reshape(1, 4 * H), l2["w_hh"].T,
        l3["w_ih"].T, (l3["b_ih"] + l3["b_hh"]).reshape(1, 4 * H), l3["w_hh"].T,
        w1p, b1p.reshape(1, M),
        params["mlp2"]["w"].T, params["mlp2"]["b"].reshape(1, M),
        params["out"]["w"].T, params["out"]["b"].reshape(1, 1),
    )

    out_p = pl.pallas_call(
        functools.partial(_fused_lstm_kernel, T=T, Bp=Bp, H=H),
        out_shape=jax.ShapeDtypeStruct((Bp, 1), jnp.float32),
        scratch_shapes=[
            pltpu.VMEM((T * Bp, 4 * H), jnp.float32),   # gate pre-activations (layers 2/3)
            pltpu.VMEM((T * Bp, H), jnp.float32),       # inter-layer hidden sequence
        ],
    )(*args)
    return out_p[:B]                                    # strip batch padding -> (B, 1)


# --------------------------------------------------------------------------
# Parameter construction (PyTorch-style uniform init, deterministic).
# --------------------------------------------------------------------------
def _uniform(key, shape, bound):
    return jax.random.uniform(key, shape, jnp.float32, -bound, bound)


def init_params(key, input_dim, lstm_dim, mlp_dim):
    params = {}
    k_lstm = 1.0 / jnp.sqrt(jnp.float32(lstm_dim))
    keys = jax.random.split(key, 32)
    ki = iter(range(32))
    lstm_layers = []
    for in_d in [input_dim, lstm_dim, lstm_dim]:
        lstm_layers.append(dict(
            w_ih=_uniform(keys[next(ki)], (4 * lstm_dim, in_d), k_lstm),
            w_hh=_uniform(keys[next(ki)], (4 * lstm_dim, lstm_dim), k_lstm),
            b_ih=_uniform(keys[next(ki)], (4 * lstm_dim,), k_lstm),
            b_hh=_uniform(keys[next(ki)], (4 * lstm_dim,), k_lstm),
        ))
    params["lstm"] = lstm_layers
    params["bn"] = dict(gamma=jnp.ones((lstm_dim,), jnp.float32),
                        beta=jnp.zeros((lstm_dim,), jnp.float32),
                        mean=jnp.zeros((lstm_dim,), jnp.float32),
                        var=jnp.ones((lstm_dim,), jnp.float32))
    k1 = 1.0 / jnp.sqrt(jnp.float32(lstm_dim))
    k2 = 1.0 / jnp.sqrt(jnp.float32(mlp_dim))
    params["mlp1"] = dict(w=_uniform(keys[next(ki)], (mlp_dim, lstm_dim), k1),
                          b=_uniform(keys[next(ki)], (mlp_dim,), k1))
    params["mlp2"] = dict(w=_uniform(keys[next(ki)], (mlp_dim, mlp_dim), k2),
                          b=_uniform(keys[next(ki)], (mlp_dim,), k2))
    params["out"] = dict(w=_uniform(keys[next(ki)], (1, mlp_dim), k2),
                         b=_uniform(keys[next(ki)], (1,), k2))
    return params


if __name__ == "__main__":
    B, T, INPUT_DIM, LSTM_DIM, MLP_DIM = 2, 8, 4, 32, 32
    key = jax.random.PRNGKey(0)
    k_params, k_x = jax.random.split(key)
    params = init_params(k_params, INPUT_DIM, LSTM_DIM, MLP_DIM)
    x = jax.random.normal(k_x, (B, T, INPUT_DIM), jnp.float32)

    y = lstm_model_forward(params, x)
    jax.block_until_ready(y)
    assert y.shape == (B, 1) and y.dtype == jnp.float32
    assert bool(jnp.all(jnp.isfinite(y)))
    print("KERNEL_OK")
</pallas_src>

<mosaic_0001>
module attributes {stable_mosaic.version = 11 : i64} {
  func.func @_fused_lstm_kernel(%arg0: memref<64x128xf32, #tpu.memory_space<vmem>>, %arg1: memref<32x128xf32, #tpu.memory_space<vmem>>, %arg2: memref<32x128xf32, #tpu.memory_space<vmem>>, %arg3: memref<1x128xf32, #tpu.memory_space<vmem>>, %arg4: memref<32x128xf32, #tpu.memory_space<vmem>>, %arg5: memref<32x128xf32, #tpu.memory_space<vmem>>, %arg6: memref<1x128xf32, #tpu.memory_space<vmem>>, %arg7: memref<32x128xf32, #tpu.memory_space<vmem>>, %arg8: memref<32x32xf32, #tpu.memory_space<vmem>>, %arg9: memref<1x32xf32, #tpu.memory_space<vmem>>, %arg10: memref<32x32xf32, #tpu.memory_space<vmem>>, %arg11: memref<1x32xf32, #tpu.memory_space<vmem>>, %arg12: memref<32x1xf32, #tpu.memory_space<vmem>>, %arg13: memref<1x1xf32, #tpu.memory_space<vmem>>, %arg14: memref<8x1xf32, #tpu.memory_space<vmem>>, %arg15: memref<64x128xf32, #tpu.memory_space<vmem>>, %arg16: memref<64x32xf32, #tpu.memory_space<vmem>>) attributes {dimension_semantics = [], scalar_prefetch = 0 : i64, scratch_operands = 2 : i64, tpu.core_type = #tpu.core_type<tc>} {
    %cst = arith.constant 0.000000e+00 : f32
    %0 = vector.broadcast %cst : f32 to vector<8x32xf32>
    %cst_0 = arith.constant 0.000000e+00 : f32
    %1 = vector.broadcast %cst_0 : f32 to vector<8x32xf32>
    %c0 = arith.constant 0 : index
    %c0_1 = arith.constant 0 : index
    %2 = vector.load %arg1[%c0, %c0_1] : memref<32x128xf32, #tpu.memory_space<vmem>>, vector<32x128xf32>
    %c0_2 = arith.constant 0 : index
    %c0_3 = arith.constant 0 : index
    %3 = vector.load %arg0[%c0_2, %c0_3] : memref<64x128xf32, #tpu.memory_space<vmem>>, vector<8x128xf32>
    %cst_4 = arith.constant dense<0.000000e+00> : vector<8x128xf32>
    %4 = tpu.matmul %0, %2, %cst_4 {dimension_numbers = #tpu.dot_dimension_numbers<[1], [0], [0], [1], [0, 0, 1, 1], [], []>} : vector<8x32xf32>, vector<32x128xf32>, vector<8x128xf32> -> vector<8x128xf32>
    %5 = arith.addf %3, %4 : vector<8x128xf32>
    %6 = vector.extract_strided_slice %5 {offsets = [0, 0], sizes = [8, 32], strides = [1, 1]} : vector<8x128xf32> to vector<8x32xf32>
    %7 = arith.negf %6 : vector<8x32xf32>
    %8 = math.exp %7 : vector<8x32xf32>
    %cst_5 = arith.constant 1.000000e+00 : f32
    %9 = vector.broadcast %cst_5 : f32 to vector<8x32xf32>
    %10 = arith.addf %9, %8 : vector<8x32xf32>
    %11 = arith.divf %9, %10 : vector<8x32xf32>
    %12 = vector.extract_strided_slice %5 {offsets = [0, 32], sizes = [8, 32], strides = [1, 1]} : vector<8x128xf32> to vector<8x32xf32>
    %13 = arith.negf %12 : vector<8x32xf32>
    %14 = math.exp %13 : vector<8x32xf32>
    %cst_6 = arith.constant 1.000000e+00 : f32
    %15 = vector.broadcast %cst_6 : f32 to vector<8x32xf32>
    %16 = arith.addf %15, %14 : vector<8x32xf32>
    %17 = arith.divf %15, %16 : vector<8x32xf32>
    %18 = vector.extract_strided_slice %5 {offsets = [0, 64], sizes = [8, 32], strides = [1, 1]} : vector<8x128xf32> to vector<8x32xf32>
    %19 = math.tanh %18 : vector<8x32xf32>
    %20 = vector.extract_strided_slice %5 {offsets = [0, 96], sizes = [8, 32], strides = [1, 1]} : vector<8x128xf32> to vector<8x32xf32>
    %21 = arith.negf %20 : vector<8x32xf32>
    %22 = math.exp %21 : vector<8x32xf32>
    %cst_7 = arith.constant 1.000000e+00 : f32
    %23 = vector.broadcast %cst_7 : f32 to vector<8x32xf32>
    %24 = arith.addf %23, %22 : vector<8x32xf32>
    %25 = arith.divf %23, %24 : vector<8x32xf32>
    %26 = arith.mulf %17, %1 : vector<8x32xf32>
    %27 = arith.mulf %11, %19 : vector<8x32xf32>
    %28 = arith.addf %26, %27 : vector<8x32xf32>
    %29 = math.tanh %28 : vector<8x32xf32>
    %30 = arith.mulf %25, %29 : vector<8x32xf32>
    %c0_8 = arith.constant 0 : index
    %c0_9 = arith.constant 0 : index
    %31 = vector.load %arg16[%c0_8, %c0_9] : memref<64x32xf32, #tpu.memory_space<vmem>>, vector<8x32xf32>
    tpu.vector_store %arg16[%c0_8, %c0_9], %30 {strides = array<i32>} : memref<64x32xf32, #tpu.memory_space<vmem>>, vector<8x32xf32>,
    %c8 = arith.constant 8 : index
    %c0_10 = arith.constant 0 : index
    %32 = vector.load %arg0[%c8, %c0_10] : memref<64x128xf32, #tpu.memory_space<vmem>>, vector<8x128xf32>
    %cst_11 = arith.constant dense<0.000000e+00> : vector<8x128xf32>
    %33 = tpu.matmul %30, %2, %cst_11 {dimension_numbers = #tpu.dot_dimension_numbers<[1], [0], [0], [1], [0, 0, 1, 1], [], []>} : vector<8x32xf32>, vector<32x128xf32>, vector<8x128xf32> -> vector<8x128xf32>
    %34 = arith.addf %32, %33 : vector<8x128xf32>
    %35 = vector.extract_strided_slice %34 {offsets = [0, 0], sizes = [8, 32], strides = [1, 1]} : vector<8x128xf32> to vector<8x32xf32>
    %36 = arith.negf %35 : vector<8x32xf32>
    %37 = math.exp %36 : vector<8x32xf32>
    %cst_12 = arith.constant 1.000000e+00 : f32
    %38 = vector.broadcast %cst_12 : f32 to vector<8x32xf32>
    %39 = arith.addf %38, %37 : vector<8x32xf32>
    %40 = arith.divf %38, %39 : vector<8x32xf32>
    %41 = vector.extract_strided_slice %34 {offsets = [0, 32], sizes = [8, 32], strides = [1, 1]} : vector<8x128xf32> to vector<8x32xf32>
    %42 = arith.negf %41 : vector<8x32xf32>
    %43 = math.exp %42 : vector<8x32xf32>
    %cst_13 = arith.constant 1.000000e+00 : f32
    %44 = vector.broadcast %cst_13 : f32 to vector<8x32xf32>
    %45 = arith.addf %44, %43 : vector<8x32xf32>
    %46 = arith.divf %44, %45 : vector<8x32xf32>
    %47 = vector.extract_strided_slice %34 {offsets = [0, 64], sizes = [8, 32], strides = [1, 1]} : vector<8x128xf32> to vector<8x32xf32>
    %48 = math.tanh %47 : vector<8x32xf32>
    %49 = vector.extract_strided_slice %34 {offsets = [0, 96], sizes = [8, 32], strides = [1, 1]} : vector<8x128xf32> to vector<8x32xf32>
    %50 = arith.negf %49 : vector<8x32xf32>
    %51 = math.exp %50 : vector<8x32xf32>
    %cst_14 = arith.constant 1.000000e+00 : f32
    %52 = vector.broadcast %cst_14 : f32 to vector<8x32xf32>
    %53 = arith.addf %52, %51 : vector<8x32xf32>
    %54 = arith.divf %52, %53 : vector<8x32xf32>
    %55 = arith.mulf %46, %28 : vector<8x32xf32>
    %56 = arith.mulf %40, %48 : vector<8x32xf32>
    %57 = arith.addf %55, %56 : vector<8x32xf32>
    %58 = math.tanh %57 : vector<8x32xf32>
    %59 = arith.mulf %54, %58 : vector<8x32xf32>
    %c8_15 = arith.constant 8 : index
    %c0_16 = arith.constant 0 : index
    %60 = vector.load %arg16[%c8_15, %c0_16] : memref<64x32xf32, #tpu.memory_space<vmem>>, vector<8x32xf32>
    tpu.vector_store %arg16[%c8_15, %c0_16], %59 {strides = array<i32>} : memref<64x32xf32, #tpu.memory_space<vmem>>, vector<8x32xf32>,
    %c16 = arith.constant 16 : index
    %c0_17 = arith.constant 0 : index
    %61 = vector.load %arg0[%c16, %c0_17] : memref<64x128xf32, #tpu.memory_space<vmem>>, vector<8x128xf32>
    %cst_18 = arith.constant dense<0.000000e+00> : vector<8x128xf32>
    %62 = tpu.matmul %59, %2, %cst_18 {dimension_numbers = #tpu.dot_dimension_numbers<[1], [0], [0], [1], [0, 0, 1, 1], [], []>} : vector<8x32xf32>, vector<32x128xf32>, vector<8x128xf32> -> vector<8x128xf32>
    %63 = arith.addf %61, %62 : vector<8x128xf32>
    %64 = vector.extract_strided_slice %63 {offsets = [0, 0], sizes = [8, 32], strides = [1, 1]} : vector<8x128xf32> to vector<8x32xf32>
    %65 = arith.negf %64 : vector<8x32xf32>
    %66 = math.exp %65 : vector<8x32xf32>
    %cst_19 = arith.constant 1.000000e+00 : f32
    %67 = vector.broadcast %cst_19 : f32 to vector<8x32xf32>
    %68 = arith.addf %67, %66 : vector<8x32xf32>
    %69 = arith.divf %67, %68 : vector<8x32xf32>
    %70 = vector.extract_strided_slice %63 {offsets = [0, 32], sizes = [8, 32], strides = [1, 1]} : vector<8x128xf32> to vector<8x32xf32>
    %71 = arith.negf %70 : vector<8x32xf32>
    %72 = math.exp %71 : vector<8x32xf32>
    %cst_20 = arith.constant 1.000000e+00 : f32
    %73 = vector.broadcast %cst_20 : f32 to vector<8x32xf32>
    %74 = arith.addf %73, %72 : vector<8x32xf32>
    %75 = arith.divf %73, %74 : vector<8x32xf32>
    %76 = vector.extract_strided_slice %63 {offsets = [0, 64], sizes = [8, 32], strides = [1, 1]} : vector<8x128xf32> to vector<8x32xf32>
    %77 = math.tanh %76 : vector<8x32xf32>
    %78 = vector.extract_strided_slice %63 {offsets = [0, 96], sizes = [8, 32], strides = [1, 1]} : vector<8x128xf32> to vector<8x32xf32>
    %79 = arith.negf %78 : vector<8x32xf32>
    %80 = math.exp %79 : vector<8x32xf32>
    %cst_21 = arith.constant 1.000000e+00 : f32
    %81 = vector.broadcast %cst_21 : f32 to vector<8x32xf32>
    %82 = arith.addf %81, %80 : vector<8x32xf32>
    %83 = arith.divf %81, %82 : vector<8x32xf32>
    %84 = arith.mulf %75, %57 : vector<8x32xf32>
    %85 = arith.mulf %69, %77 : vector<8x32xf32>
    %86 = arith.addf %84, %85 : vector<8x32xf32>
    %87 = math.tanh %86 : vector<8x32xf32>
    %88 = arith.mulf %83, %87 : vector<8x32xf32>
    %c16_22 = arith.constant 16 : index
    %c0_23 = arith.constant 0 : index
    %89 = vector.load %arg16[%c16_22, %c0_23] : memref<64x32xf32, #tpu.memory_space<vmem>>, vector<8x32xf32>
    tpu.vector_store %arg16[%c16_22, %c0_23], %88 {strides = array<i32>} : memref<64x32xf32, #tpu.memory_space<vmem>>, vector<8x32xf32>,
    %c24 = arith.constant 24 : index
    %c0_24 = arith.constant 0 : index
    %90 = vector.load %arg0[%c24, %c0_24] : memref<64x128xf32, #tpu.memory_space<vmem>>, vector<8x128xf32>
    %cst_25 = arith.constant dense<0.000000e+00> : vector<8x128xf32>
    %91 = tpu.matmul %88, %2, %cst_25 {dimension_numbers = #tpu.dot_dimension_numbers<[1], [0], [0], [1], [0, 0, 1, 1], [], []>} : vector<8x32xf32>, vector<32x128xf32>, vector<8x128xf32> -> vector<8x128xf32>
    %92 = arith.addf %90, %91 : vector<8x128xf32>
    %93 = vector.extract_strided_slice %92 {offsets = [0, 0], sizes = [8, 32], strides = [1, 1]} : vector<8x128xf32> to vector<8x32xf32>
    %94 = arith.negf %93 : vector<8x32xf32>
    %95 = math.exp %94 : vector<8x32xf32>
    %cst_26 = arith.constant 1.000000e+00 : f32
    %96 = vector.broadcast %cst_26 : f32 to vector<8x32xf32>
    %97 = arith.addf %96, %95 : vector<8x32xf32>
    %98 = arith.divf %96, %97 : vector<8x32xf32>
    %99 = vector.extract_strided_slice %92 {offsets = [0, 32], sizes = [8, 32], strides = [1, 1]} : vector<8x128xf32> to vector<8x32xf32>
    %100 = arith.negf %99 : vector<8x32xf32>
    %101 = math.exp %100 : vector<8x32xf32>
    %cst_27 = arith.constant 1.000000e+00 : f32
    %102 = vector.broadcast %cst_27 : f32 to vector<8x32xf32>
    %103 = arith.addf %102, %101 : vector<8x32xf32>
    %104 = arith.divf %102, %103 : vector<8x32xf32>
    %105 = vector.extract_strided_slice %92 {offsets = [0, 64], sizes = [8, 32], strides = [1, 1]} : vector<8x128xf32> to vector<8x32xf32>
    %106 = math.tanh %105 : vector<8x32xf32>
    %107 = vector.extract_strided_slice %92 {offsets = [0, 96], sizes = [8, 32], strides = [1, 1]} : vector<8x128xf32> to vector<8x32xf32>
    %108 = arith.negf %107 : vector<8x32xf32>
    %109 = math.exp %108 : vector<8x32xf32>
    %cst_28 = arith.constant 1.000000e+00 : f32
    %110 = vector.broadcast %cst_28 : f32 to vector<8x32xf32>
    %111 = arith.addf %110, %109 : vector<8x32xf32>
    %112 = arith.divf %110, %111 : vector<8x32xf32>
    %113 = arith.mulf %104, %86 : vector<8x32xf32>
    %114 = arith.mulf %98, %106 : vector<8x32xf32>
    %115 = arith.addf %113, %114 : vector<8x32xf32>
    %116 = math.tanh %115 : vector<8x32xf32>
    %117 = arith.mulf %112, %116 : vector<8x32xf32>
    %c24_29 = arith.constant 24 : index
    %c0_30 = arith.constant 0 : index
    %118 = vector.load %arg16[%c24_29, %c0_30] : memref<64x32xf32, #tpu.memory_space<vmem>>, vector<8x32xf32>
    tpu.vector_store %arg16[%c24_29, %c0_30], %117 {strides = array<i32>} : memref<64x32xf32, #tpu.memory_space<vmem>>, vector<8x32xf32>,
    %c32 = arith.constant 32 : index
    %c0_31 = arith.constant 0 : index
    %119 = vector.load %arg0[%c32, %c0_31] : memref<64x128xf32, #tpu.memory_space<vmem>>, vector<8x128xf32>
    %cst_32 = arith.constant dense<0.000000e+00> : vector<8x128xf32>
    %120 = tpu.matmul %117, %2, %cst_32 {dimension_numbers = #tpu.dot_dimension_numbers<[1], [0], [0], [1], [0, 0, 1, 1], [], []>} : vector<8x32xf32>, vector<32x128xf32>, vector<8x128xf32> -> vector<8x128xf32>
    %121 = arith.addf %119, %120 : vector<8x128xf32>
    %122 = vector.extract_strided_slice %121 {offsets = [0, 0], sizes = [8, 32], strides = [1, 1]} : vector<8x128xf32> to vector<8x32xf32>
    %123 = arith.negf %122 : vector<8x32xf32>
    %124 = math.exp %123 : vector<8x32xf32>
    %cst_33 = arith.constant 1.000000e+00 : f32
    %125 = vector.broadcast %cst_33 : f32 to vector<8x32xf32>
    %126 = arith.addf %125, %124 : vector<8x32xf32>
    %127 = arith.divf %125, %126 : vector<8x32xf32>
    %128 = vector.extract_strided_slice %121 {offsets = [0, 32], sizes = [8, 32], strides = [1, 1]} : vector<8x128xf32> to vector<8x32xf32>
    %129 = arith.negf %128 : vector<8x32xf32>
    %130 = math.exp %129 : vector<8x32xf32>
    %cst_34 = arith.constant 1.000000e+00 : f32
    %131 = vector.broadcast %cst_34 : f32 to vector<8x32xf32>
    %132 = arith.addf %131, %130 : vector<8x32xf32>
    %133 = arith.divf %131, %132 : vector<8x32xf32>
    %134 = vector.extract_strided_slice %121 {offsets = [0, 64], sizes = [8, 32], strides = [1, 1]} : vector<8x128xf32> to vector<8x32xf32>
    %135 = math.tanh %134 : vector<8x32xf32>
    %136 = vector.extract_strided_slice %121 {offsets = [0, 96], sizes = [8, 32], strides = [1, 1]} : vector<8x128xf32> to vector<8x32xf32>
    %137 = arith.negf %136 : vector<8x32xf32>
    %138 = math.exp %137 : vector<8x32xf32>
    %cst_35 = arith.constant 1.000000e+00 : f32
    %139 = vector.broadcast %cst_35 : f32 to vector<8x32xf32>
    %140 = arith.addf %139, %138 : vector<8x32xf32>
    %141 = arith.divf %139, %140 : vector<8x32xf32>
    %142 = arith.mulf %133, %115 : vector<8x32xf32>
    %143 = arith.mulf %127, %135 : vector<8x32xf32>
    %144 = arith.addf %142, %143 : vector<8x32xf32>
    %145 = math.tanh %144 : vector<8x32xf32>
    %146 = arith.mulf %141, %145 : vector<8x32xf32>
    %c32_36 = arith.constant 32 : index
    %c0_37 = arith.constant 0 : index
    %147 = vector.load %arg16[%c32_36, %c0_37] : memref<64x32xf32, #tpu.memory_space<vmem>>, vector<8x32xf32>
    tpu.vector_store %arg16[%c32_36, %c0_37], %146 {strides = array<i32>} : memref<64x32xf32, #tpu.memory_space<vmem>>, vector<8x32xf32>,
    %c40 = arith.constant 40 : index
    %c0_38 = arith.constant 0 : index
    %148 = vector.load %arg0[%c40, %c0_38] : memref<64x128xf32, #tpu.memory_space<vmem>>, vector<8x128xf32>
    %cst_39 = arith.constant dense<0.000000e+00> : vector<8x128xf32>
    %149 = tpu.matmul %146, %2, %cst_39 {dimension_numbers = #tpu.dot_dimension_numbers<[1], [0], [0], [1], [0, 0, 1, 1], [], []>} : vector<8x32xf32>, vector<32x128xf32>, vector<8x128xf32> -> vector<8x128xf32>
    %150 = arith.addf %148, %149 : vector<8x128xf32>
    %151 = vector.extract_strided_slice %150 {offsets = [0, 0], sizes = [8, 32], strides = [1, 1]} : vector<8x128xf32> to vector<8x32xf32>
    %152 = arith.negf %151 : vector<8x32xf32>
    %153 = math.exp %152 : vector<8x32xf32>
    %cst_40 = arith.constant 1.000000e+00 : f32
    %154 = vector.broadcast %cst_40 : f32 to vector<8x32xf32>
    %155 = arith.addf %154, %153 : vector<8x32xf32>
    %156 = arith.divf %154, %155 : vector<8x32xf32>
    %157 = vector.extract_strided_slice %150 {offsets = [0, 32], sizes = [8, 32], strides = [1, 1]} : vector<8x128xf32> to vector<8x32xf32>
    %158 = arith.negf %157 : vector<8x32xf32>
    %159 = math.exp %158 : vector<8x32xf32>
    %cst_41 = arith.constant 1.000000e+00 : f32
    %160 = vector.broadcast %cst_41 : f32 to vector<8x32xf32>
    %161 = arith.addf %160, %159 : vector<8x32xf32>
    %162 = arith.divf %160, %161 : vector<8x32xf32>
    %163 = vector.extract_strided_slice %150 {offsets = [0, 64], sizes = [8, 32], strides = [1, 1]} : vector<8x128xf32> to vector<8x32xf32>
    %164 = math.tanh %163 : vector<8x32xf32>
    %165 = vector.extract_strided_slice %150 {offsets = [0, 96], sizes = [8, 32], strides = [1, 1]} : vector<8x128xf32> to vector<8x32xf32>
    %166 = arith.negf %165 : vector<8x32xf32>
    %167 = math.exp %166 : vector<8x32xf32>
    %cst_42 = arith.constant 1.000000e+00 : f32
    %168 = vector.broadcast %cst_42 : f32 to vector<8x32xf32>
    %169 = arith.addf %168, %167 : vector<8x32xf32>
    %170 = arith.divf %168, %169 : vector<8x32xf32>
    %171 = arith.mulf %162, %144 : vector<8x32xf32>
    %172 = arith.mulf %156, %164 : vector<8x32xf32>
    %173 = arith.addf %171, %172 : vector<8x32xf32>
    %174 = math.tanh %173 : vector<8x32xf32>
    %175 = arith.mulf %170, %174 : vector<8x32xf32>
    %c40_43 = arith.constant 40 : index
    %c0_44 = arith.constant 0 : index
    %176 = vector.load %arg16[%c40_43, %c0_44] : memref<64x32xf32, #tpu.memory_space<vmem>>, vector<8x32xf32>
    tpu.vector_store %arg16[%c40_43, %c0_44], %175 {strides = array<i32>} : memref<64x32xf32, #tpu.memory_space<vmem>>, vector<8x32xf32>,
    %c48 = arith.constant 48 : index
    %c0_45 = arith.constant 0 : index
    %177 = vector.load %arg0[%c48, %c0_45] : memref<64x128xf32, #tpu.memory_space<vmem>>, vector<8x128xf32>
    %cst_46 = arith.constant dense<0.000000e+00> : vector<8x128xf32>
    %178 = tpu.matmul %175, %2, %cst_46 {dimension_numbers = #tpu.dot_dimension_numbers<[1], [0], [0], [1], [0, 0, 1, 1], [], []>} : vector<8x32xf32>, vector<32x128xf32>, vector<8x128xf32> -> vector<8x128xf32>
    %179 = arith.addf %177, %178 : vector<8x128xf32>
    %180 = vector.extract_strided_slice %179 {offsets = [0, 0], sizes = [8, 32], strides = [1, 1]} : vector<8x128xf32> to vector<8x32xf32>
    %181 = arith.negf %180 : vector<8x32xf32>
    %182 = math.exp %181 : vector<8x32xf32>
    %cst_47 = arith.constant 1.000000e+00 : f32
    %183 = vector.broadcast %cst_47 : f32 to vector<8x32xf32>
    %184 = arith.addf %183, %182 : vector<8x32xf32>
    %185 = arith.divf %183, %184 : vector<8x32xf32>
    %186 = vector.extract_strided_slice %179 {offsets = [0, 32], sizes = [8, 32], strides = [1, 1]} : vector<8x128xf32> to vector<8x32xf32>
    %187 = arith.negf %186 : vector<8x32xf32>
    %188 = math.exp %187 : vector<8x32xf32>
    %cst_48 = arith.constant 1.000000e+00 : f32
    %189 = vector.broadcast %cst_48 : f32 to vector<8x32xf32>
    %190 = arith.addf %189, %188 : vector<8x32xf32>
    %191 = arith.divf %189, %190 : vector<8x32xf32>
    %192 = vector.extract_strided_slice %179 {offsets = [0, 64], sizes = [8, 32], strides = [1, 1]} : vector<8x128xf32> to vector<8x32xf32>
    %193 = math.tanh %192 : vector<8x32xf32>
    %194 = vector.extract_strided_slice %179 {offsets = [0, 96], sizes = [8, 32], strides = [1, 1]} : vector<8x128xf32> to vector<8x32xf32>
    %195 = arith.negf %194 : vector<8x32xf32>
    %196 = math.exp %195 : vector<8x32xf32>
    %cst_49 = arith.constant 1.000000e+00 : f32
    %197 = vector.broadcast %cst_49 : f32 to vector<8x32xf32>
    %198 = arith.addf %197, %196 : vector<8x32xf32>
    %199 = arith.divf %197, %198 : vector<8x32xf32>
    %200 = arith.mulf %191, %173 : vector<8x32xf32>
    %201 = arith.mulf %185, %193 : vector<8x32xf32>
    %202 = arith.addf %200, %201 : vector<8x32xf32>
    %203 = math.tanh %202 : vector<8x32xf32>
    %204 = arith.mulf %199, %203 : vector<8x32xf32>
    %c48_50 = arith.constant 48 : index
    %c0_51 = arith.constant 0 : index
    %205 = vector.load %arg16[%c48_50, %c0_51] : memref<64x32xf32, #tpu.memory_space<vmem>>, vector<8x32xf32>
    tpu.vector_store %arg16[%c48_50, %c0_51], %204 {strides = array<i32>} : memref<64x32xf32, #tpu.memory_space<vmem>>, vector<8x32xf32>,
    %c56 = arith.constant 56 : index
    %c0_52 = arith.constant 0 : index
    %206 = vector.load %arg0[%c56, %c0_52] : memref<64x128xf32, #tpu.memory_space<vmem>>, vector<8x128xf32>
    %cst_53 = arith.constant dense<0.000000e+00> : vector<8x128xf32>
    %207 = tpu.matmul %204, %2, %cst_53 {dimension_numbers = #tpu.dot_dimension_numbers<[1], [0], [0], [1], [0, 0, 1, 1], [], []>} : vector<8x32xf32>, vector<32x128xf32>, vector<8x128xf32> -> vector<8x128xf32>
    %208 = arith.addf %206, %207 : vector<8x128xf32>
    %209 = vector.extract_strided_slice %208 {offsets = [0, 0], sizes = [8, 32], strides = [1, 1]} : vector<8x128xf32> to vector<8x32xf32>
    %210 = arith.negf %209 : vector<8x32xf32>
    %211 = math.exp %210 : vector<8x32xf32>
    %cst_54 = arith.constant 1.000000e+00 : f32
    %212 = vector.broadcast %cst_54 : f32 to vector<8x32xf32>
    %213 = arith.addf %212, %211 : vector<8x32xf32>
    %214 = arith.divf %212, %213 : vector<8x32xf32>
    %215 = vector.extract_strided_slice %208 {offsets = [0, 32], sizes = [8, 32], strides = [1, 1]} : vector<8x128xf32> to vector<8x32xf32>
    %216 = arith.negf %215 : vector<8x32xf32>
    %217 = math.exp %216 : vector<8x32xf32>
    %cst_55 = arith.constant 1.000000e+00 : f32
    %218 = vector.broadcast %cst_55 : f32 to vector<8x32xf32>
    %219 = arith.addf %218, %217 : vector<8x32xf32>
    %220 = arith.divf %218, %219 : vector<8x32xf32>
    %221 = vector.extract_strided_slice %208 {offsets = [0, 64], sizes = [8, 32], strides = [1, 1]} : vector<8x128xf32> to vector<8x32xf32>
    %222 = math.tanh %221 : vector<8x32xf32>
    %223 = vector.extract_strided_slice %208 {offsets = [0, 96], sizes = [8, 32], strides = [1, 1]} : vector<8x128xf32> to vector<8x32xf32>
    %224 = arith.negf %223 : vector<8x32xf32>
    %225 = math.exp %224 : vector<8x32xf32>
    %cst_56 = arith.constant 1.000000e+00 : f32
    %226 = vector.broadcast %cst_56 : f32 to vector<8x32xf32>
    %227 = arith.addf %226, %225 : vector<8x32xf32>
    %228 = arith.divf %226, %227 : vector<8x32xf32>
    %229 = arith.mulf %220, %202 : vector<8x32xf32>
    %230 = arith.mulf %214, %222 : vector<8x32xf32>
    %231 = arith.addf %229, %230 : vector<8x32xf32>
    %232 = math.tanh %231 : vector<8x32xf32>
    %233 = arith.mulf %228, %232 : vector<8x32xf32>
    %c56_57 = arith.constant 56 : index
    %c0_58 = arith.constant 0 : index
    %234 = vector.load %arg16[%c56_57, %c0_58] : memref<64x32xf32, #tpu.memory_space<vmem>>, vector<8x32xf32>
    tpu.vector_store %arg16[%c56_57, %c0_58], %233 {strides = array<i32>} : memref<64x32xf32, #tpu.memory_space<vmem>>, vector<8x32xf32>,
    %c0_59 = arith.constant 0 : index
    %c0_60 = arith.constant 0 : index
    %235 = vector.load %arg16[%c0_59, %c0_60] : memref<64x32xf32, #tpu.memory_space<vmem>>, vector<64x32xf32>
    %c0_61 = arith.constant 0 : index
    %c0_62 = arith.constant 0 : index
    %236 = vector.load %arg2[%c0_61, %c0_62] : memref<32x128xf32, #tpu.memory_space<vmem>>, vector<32x128xf32>
    %cst_63 = arith.constant dense<0.000000e+00> : vector<64x128xf32>
    %237 = tpu.matmul %235, %236, %cst_63 {dimension_numbers = #tpu.dot_dimension_numbers<[1], [0], [0], [1], [0, 0, 1, 1], [], []>} : vector<64x32xf32>, vector<32x128xf32>, vector<64x128xf32> -> vector<64x128xf32>
    %c0_64 = arith.constant 0 : index
    %c0_65 = arith.constant 0 : index
    %238 = vector.load %arg3[%c0_64, %c0_65] : memref<1x128xf32, #tpu.memory_space<vmem>>, vector<1x128xf32>
    %239 = vector.broadcast %238 : vector<1x128xf32> to vector<64x128xf32>
    %240 = arith.addf %237, %239 : vector<64x128xf32>
    %c0_66 = arith.constant 0 : index
    %c0_67 = arith.constant 0 : index
    %241 = vector.load %arg15[%c0_66, %c0_67] : memref<64x128xf32, #tpu.memory_space<vmem>>, vector<64x128xf32>
    tpu.vector_store %arg15[%c0_66, %c0_67], %240 {strides = array<i32>} : memref<64x128xf32, #tpu.memory_space<vmem>>, vector<64x128xf32>,
    %cst_68 = arith.constant 0.000000e+00 : f32
    %242 = vector.broadcast %cst_68 : f32 to vector<8x32xf32>
    %cst_69 = arith.constant 0.000000e+00 : f32
    %243 = vector.broadcast %cst_69 : f32 to vector<8x32xf32>
    %c0_70 = arith.constant 0 : index
    %c0_71 = arith.constant 0 : index
    %244 = vector.load %arg4[%c0_70, %c0_71] : memref<32x128xf32, #tpu.memory_space<vmem>>, vector<32x128xf32>
    %c0_72 = arith.constant 0 : index
    %c0_73 = arith.constant 0 : index
    %245 = vector.load %arg15[%c0_72, %c0_73] : memref<64x128xf32, #tpu.memory_space<vmem>>, vector<8x128xf32>
    %cst_74 = arith.constant dense<0.000000e+00> : vector<8x128xf32>
    %246 = tpu.matmul %242, %244, %cst_74 {dimension_numbers = #tpu.dot_dimension_numbers<[1], [0], [0], [1], [0, 0, 1, 1], [], []>} : vector<8x32xf32>, vector<32x128xf32>, vector<8x128xf32> -> vector<8x128xf32>
    %247 = arith.addf %245, %246 : vector<8x128xf32>
    %248 = vector.extract_strided_slice %247 {offsets = [0, 0], sizes = [8, 32], strides = [1, 1]} : vector<8x128xf32> to vector<8x32xf32>
    %249 = arith.negf %248 : vector<8x32xf32>
    %250 = math.exp %249 : vector<8x32xf32>
    %cst_75 = arith.constant 1.000000e+00 : f32
    %251 = vector.broadcast %cst_75 : f32 to vector<8x32xf32>
    %252 = arith.addf %251, %250 : vector<8x32xf32>
    %253 = arith.divf %251, %252 : vector<8x32xf32>
    %254 = vector.extract_strided_slice %247 {offsets = [0, 32], sizes = [8, 32], strides = [1, 1]} : vector<8x128xf32> to vector<8x32xf32>
    %255 = arith.negf %254 : vector<8x32xf32>
    %256 = math.exp %255 : vector<8x32xf32>
    %cst_76 = arith.constant 1.000000e+00 : f32
    %257 = vector.broadcast %cst_76 : f32 to vector<8x32xf32>
    %258 = arith.addf %257, %256 : vector<8x32xf32>
    %259 = arith.divf %257, %258 : vector<8x32xf32>
    %260 = vector.extract_strided_slice %247 {offsets = [0, 64], sizes = [8, 32], strides = [1, 1]} : vector<8x128xf32> to vector<8x32xf32>
    %261 = math.tanh %260 : vector<8x32xf32>
    %262 = vector.extract_strided_slice %247 {offsets = [0, 96], sizes = [8, 32], strides = [1, 1]} : vector<8x128xf32> to vector<8x32xf32>
    %263 = arith.negf %262 : vector<8x32xf32>
    %264 = math.exp %263 : vector<8x32xf32>
    %cst_77 = arith.constant 1.000000e+00 : f32
    %265 = vector.broadcast %cst_77 : f32 to vector<8x32xf32>
    %266 = arith.addf %265, %264 : vector<8x32xf32>
    %267 = arith.divf %265, %266 : vector<8x32xf32>
    %268 = arith.mulf %259, %243 : vector<8x32xf32>
    %269 = arith.mulf %253, %261 : vector<8x32xf32>
    %270 = arith.addf %268, %269 : vector<8x32xf32>
    %271 = math.tanh %270 : vector<8x32xf32>
    %272 = arith.mulf %267, %271 : vector<8x32xf32>
    %c0_78 = arith.constant 0 : index
    %c0_79 = arith.constant 0 : index
    %273 = vector.load %arg16[%c0_78, %c0_79] : memref<64x32xf32, #tpu.memory_space<vmem>>, vector<8x32xf32>
    tpu.vector_store %arg16[%c0_78, %c0_79], %272 {strides = array<i32>} : memref<64x32xf32, #tpu.memory_space<vmem>>, vector<8x32xf32>,
    %c8_80 = arith.constant 8 : index
    %c0_81 = arith.constant 0 : index
    %274 = vector.load %arg15[%c8_80, %c0_81] : memref<64x128xf32, #tpu.memory_space<vmem>>, vector<8x128xf32>
    %cst_82 = arith.constant dense<0.000000e+00> : vector<8x128xf32>
    %275 = tpu.matmul %272, %244, %cst_82 {dimension_numbers = #tpu.dot_dimension_numbers<[1], [0], [0], [1], [0, 0, 1, 1], [], []>} : vector<8x32xf32>, vector<32x128xf32>, vector<8x128xf32> -> vector<8x128xf32>
    %276 = arith.addf %274, %275 : vector<8x128xf32>
    %277 = vector.extract_strided_slice %276 {offsets = [0, 0], sizes = [8, 32], strides = [1, 1]} : vector<8x128xf32> to vector<8x32xf32>
    %278 = arith.negf %277 : vector<8x32xf32>
    %279 = math.exp %278 : vector<8x32xf32>
    %cst_83 = arith.constant 1.000000e+00 : f32
    %280 = vector.broadcast %cst_83 : f32 to vector<8x32xf32>
    %281 = arith.addf %280, %279 : vector<8x32xf32>
    %282 = arith.divf %280, %281 : vector<8x32xf32>
    %283 = vector.extract_strided_slice %276 {offsets = [0, 32], sizes = [8, 32], strides = [1, 1]} : vector<8x128xf32> to vector<8x32xf32>
    %284 = arith.negf %283 : vector<8x32xf32>
    %285 = math.exp %284 : vector<8x32xf32>
    %cst_84 = arith.constant 1.000000e+00 : f32
    %286 = vector.broadcast %cst_84 : f32 to vector<8x32xf32>
    %287 = arith.addf %286, %285 : vector<8x32xf32>
    %288 = arith.divf %286, %287 : vector<8x32xf32>
    %289 = vector.extract_strided_slice %276 {offsets = [0, 64], sizes = [8, 32], strides = [1, 1]} : vector<8x128xf32> to vector<8x32xf32>
    %290 = math.tanh %289 : vector<8x32xf32>
    %291 = vector.extract_strided_slice %276 {offsets = [0, 96], sizes = [8, 32], strides = [1, 1]} : vector<8x128xf32> to vector<8x32xf32>
    %292 = arith.negf %291 : vector<8x32xf32>
    %293 = math.exp %292 : vector<8x32xf32>
    %cst_85 = arith.constant 1.000000e+00 : f32
    %294 = vector.broadcast %cst_85 : f32 to vector<8x32xf32>
    %295 = arith.addf %294, %293 : vector<8x32xf32>
    %296 = arith.divf %294, %295 : vector<8x32xf32>
    %297 = arith.mulf %288, %270 : vector<8x32xf32>
    %298 = arith.mulf %282, %290 : vector<8x32xf32>
    %299 = arith.addf %297, %298 : vector<8x32xf32>
    %300 = math.tanh %299 : vector<8x32xf32>
    %301 = arith.mulf %296, %300 : vector<8x32xf32>
    %c8_86 = arith.constant 8 : index
    %c0_87 = arith.constant 0 : index
    %302 = vector.load %arg16[%c8_86, %c0_87] : memref<64x32xf32, #tpu.memory_space<vmem>>, vector<8x32xf32>
    tpu.vector_store %arg16[%c8_86, %c0_87], %301 {strides = array<i32>} : memref<64x32xf32, #tpu.memory_space<vmem>>, vector<8x32xf32>,
    %c16_88 = arith.constant 16 : index
    %c0_89 = arith.constant 0 : index
    %303 = vector.load %arg15[%c16_88, %c0_89] : memref<64x128xf32, #tpu.memory_space<vmem>>, vector<8x128xf32>
    %cst_90 = arith.constant dense<0.000000e+00> : vector<8x128xf32>
    %304 = tpu.matmul %301, %244, %cst_90 {dimension_numbers = #tpu.dot_dimension_numbers<[1], [0], [0], [1], [0, 0, 1, 1], [], []>} : vector<8x32xf32>, vector<32x128xf32>, vector<8x128xf32> -> vector<8x128xf32>
    %305 = arith.addf %303, %304 : vector<8x128xf32>
    %306 = vector.extract_strided_slice %305 {offsets = [0, 0], sizes = [8, 32], strides = [1, 1]} : vector<8x128xf32> to vector<8x32xf32>
    %307 = arith.negf %306 : vector<8x32xf32>
    %308 = math.exp %307 : vector<8x32xf32>
    %cst_91 = arith.constant 1.000000e+00 : f32
    %309 = vector.broadcast %cst_91 : f32 to vector<8x32xf32>
    %310 = arith.addf %309, %308 : vector<8x32xf32>
    %311 = arith.divf %309, %310 : vector<8x32xf32>
    %312 = vector.extract_strided_slice %305 {offsets = [0, 32], sizes = [8, 32], strides = [1, 1]} : vector<8x128xf32> to vector<8x32xf32>
    %313 = arith.negf %312 : vector<8x32xf32>
    %314 = math.exp %313 : vector<8x32xf32>
    %cst_92 = arith.constant 1.000000e+00 : f32
    %315 = vector.broadcast %cst_92 : f32 to vector<8x32xf32>
    %316 = arith.addf %315, %314 : vector<8x32xf32>
    %317 = arith.divf %315, %316 : vector<8x32xf32>
    %318 = vector.extract_strided_slice %305 {offsets = [0, 64], sizes = [8, 32], strides = [1, 1]} : vector<8x128xf32> to vector<8x32xf32>
    %319 = math.tanh %318 : vector<8x32xf32>
    %320 = vector.extract_strided_slice %305 {offsets = [0, 96], sizes = [8, 32], strides = [1, 1]} : vector<8x128xf32> to vector<8x32xf32>
    %321 = arith.negf %320 : vector<8x32xf32>
    %322 = math.exp %321 : vector<8x32xf32>
    %cst_93 = arith.constant 1.000000e+00 : f32
    %323 = vector.broadcast %cst_93 : f32 to vector<8x32xf32>
    %324 = arith.addf %323, %322 : vector<8x32xf32>
    %325 = arith.divf %323, %324 : vector<8x32xf32>
    %326 = arith.mulf %317, %299 : vector<8x32xf32>
    %327 = arith.mulf %311, %319 : vector<8x32xf32>
    %328 = arith.addf %326, %327 : vector<8x32xf32>
    %329 = math.tanh %328 : vector<8x32xf32>
    %330 = arith.mulf %325, %329 : vector<8x32xf32>
    %c16_94 = arith.constant 16 : index
    %c0_95 = arith.constant 0 : index
    %331 = vector.load %arg16[%c16_94, %c0_95] : memref<64x32xf32, #tpu.memory_space<vmem>>, vector<8x32xf32>
    tpu.vector_store %arg16[%c16_94, %c0_95], %330 {strides = array<i32>} : memref<64x32xf32, #tpu.memory_space<vmem>>, vector<8x32xf32>,
    %c24_96 = arith.constant 24 : index
    %c0_97 = arith.constant 0 : index
    %332 = vector.load %arg15[%c24_96, %c0_97] : memref<64x128xf32, #tpu.memory_space<vmem>>, vector<8x128xf32>
    %cst_98 = arith.constant dense<0.000000e+00> : vector<8x128xf32>
    %333 = tpu.matmul %330, %244, %cst_98 {dimension_numbers = #tpu.dot_dimension_numbers<[1], [0], [0], [1], [0, 0, 1, 1], [], []>} : vector<8x32xf32>, vector<32x128xf32>, vector<8x128xf32> -> vector<8x128xf32>
    %334 = arith.addf %332, %333 : vector<8x128xf32>
    %335 = vector.extract_strided_slice %334 {offsets = [0, 0], sizes = [8, 32], strides = [1, 1]} : vector<8x128xf32> to vector<8x32xf32>
    %336 = arith.negf %335 : vector<8x32xf32>
    %337 = math.exp %336 : vector<8x32xf32>
    %cst_99 = arith.constant 1.000000e+00 : f32
    %338 = vector.broadcast %cst_99 : f32 to vector<8x32xf32>
    %339 = arith.addf %338, %337 : vector<8x32xf32>
    %340 = arith.divf %338, %339 : vector<8x32xf32>
    %341 = vector.extract_strided_slice %334 {offsets = [0, 32], sizes = [8, 32], strides = [1, 1]} : vector<8x128xf32> to vector<8x32xf32>
    %342 = arith.negf %341 : vector<8x32xf32>
    %343 = math.exp %342 : vector<8x32xf32>
    %cst_100 = arith.constant 1.000000e+00 : f32
    %344 = vector.broadcast %cst_100 : f32 to vector<8x32xf32>
    %345 = arith.addf %344, %343 : vector<8x32xf32>
    %346 = arith.divf %344, %345 : vector<8x32xf32>
    %347 = vector.extract_strided_slice %334 {offsets = [0, 64], sizes = [8, 32], strides = [1, 1]} : vector<8x128xf32> to vector<8x32xf32>
    %348 = math.tanh %347 : vector<8x32xf32>
    %349 = vector.extract_strided_slice %334 {offsets = [0, 96], sizes = [8, 32], strides = [1, 1]} : vector<8x128xf32> to vector<8x32xf32>
    %350 = arith.negf %349 : vector<8x32xf32>
    %351 = math.exp %350 : vector<8x32xf32>
    %cst_101 = arith.constant 1.000000e+00 : f32
    %352 = vector.broadcast %cst_101 : f32 to vector<8x32xf32>
    %353 = arith.addf %352, %351 : vector<8x32xf32>
    %354 = arith.divf %352, %353 : vector<8x32xf32>
    %355 = arith.mulf %346, %328 : vector<8x32xf32>
    %356 = arith.mulf %340, %348 : vector<8x32xf32>
    %357 = arith.addf %355, %356 : vector<8x32xf32>
    %358 = math.tanh %357 : vector<8x32xf32>
    %359 = arith.mulf %354, %358 : vector<8x32xf32>
    %c24_102 = arith.constant 24 : index
    %c0_103 = arith.constant 0 : index
    %360 = vector.load %arg16[%c24_102, %c0_103] : memref<64x32xf32, #tpu.memory_space<vmem>>, vector<8x32xf32>
    tpu.vector_store %arg16[%c24_102, %c0_103], %359 {strides = array<i32>} : memref<64x32xf32, #tpu.memory_space<vmem>>, vector<8x32xf32>,
    %c32_104 = arith.constant 32 : index
    %c0_105 = arith.constant 0 : index
    %361 = vector.load %arg15[%c32_104, %c0_105] : memref<64x128xf32, #tpu.memory_space<vmem>>, vector<8x128xf32>
    %cst_106 = arith.constant dense<0.000000e+00> : vector<8x128xf32>
    %362 = tpu.matmul %359, %244, %cst_106 {dimension_numbers = #tpu.dot_dimension_numbers<[1], [0], [0], [1], [0, 0, 1, 1], [], []>} : vector<8x32xf32>, vector<32x128xf32>, vector<8x128xf32> -> vector<8x128xf32>
    %363 = arith.addf %361, %362 : vector<8x128xf32>
    %364 = vector.extract_strided_slice %363 {offsets = [0, 0], sizes = [8, 32], strides = [1, 1]} : vector<8x128xf32> to vector<8x32xf32>
    %365 = arith.negf %364 : vector<8x32xf32>
    %366 = math.exp %365 : vector<8x32xf32>
    %cst_107 = arith.constant 1.000000e+00 : f32
    %367 = vector.broadcast %cst_107 : f32 to vector<8x32xf32>
    %368 = arith.addf %367, %366 : vector<8x32xf32>
    %369 = arith.divf %367, %368 : vector<8x32xf32>
    %370 = vector.extract_strided_slice %363 {offsets = [0, 32], sizes = [8, 32], strides = [1, 1]} : vector<8x128xf32> to vector<8x32xf32>
    %371 = arith.negf %370 : vector<8x32xf32>
    %372 = math.exp %371 : vector<8x32xf32>
    %cst_108 = arith.constant 1.000000e+00 : f32
    %373 = vector.broadcast %cst_108 : f32 to vector<8x32xf32>
    %374 = arith.addf %373, %372 : vector<8x32xf32>
    %375 = arith.divf %373, %374 : vector<8x32xf32>
    %376 = vector.extract_strided_slice %363 {offsets = [0, 64], sizes = [8, 32], strides = [1, 1]} : vector<8x128xf32> to vector<8x32xf32>
    %377 = math.tanh %376 : vector<8x32xf32>
    %378 = vector.extract_strided_slice %363 {offsets = [0, 96], sizes = [8, 32], strides = [1, 1]} : vector<8x128xf32> to vector<8x32xf32>
    %379 = arith.negf %378 : vector<8x32xf32>
    %380 = math.exp %379 : vector<8x32xf32>
    %cst_109 = arith.constant 1.000000e+00 : f32
    %381 = vector.broadcast %cst_109 : f32 to vector<8x32xf32>
    %382 = arith.addf %381, %380 : vector<8x32xf32>
    %383 = arith.divf %381, %382 : vector<8x32xf32>
    %384 = arith.mulf %375, %357 : vector<8x32xf32>
    %385 = arith.mulf %369, %377 : vector<8x32xf32>
    %386 = arith.addf %384, %385 : vector<8x32xf32>
    %387 = math.tanh %386 : vector<8x32xf32>
    %388 = arith.mulf %383, %387 : vector<8x32xf32>
    %c32_110 = arith.constant 32 : index
    %c0_111 = arith.constant 0 : index
    %389 = vector.load %arg16[%c32_110, %c0_111] : memref<64x32xf32, #tpu.memory_space<vmem>>, vector<8x32xf32>
    tpu.vector_store %arg16[%c32_110, %c0_111], %388 {strides = array<i32>} : memref<64x32xf32, #tpu.memory_space<vmem>>, vector<8x32xf32>,
    %c40_112 = arith.constant 40 : index
    %c0_113 = arith.constant 0 : index
    %390 = vector.load %arg15[%c40_112, %c0_113] : memref<64x128xf32, #tpu.memory_space<vmem>>, vector<8x128xf32>
    %cst_114 = arith.constant dense<0.000000e+00> : vector<8x128xf32>
    %391 = tpu.matmul %388, %244, %cst_114 {dimension_numbers = #tpu.dot_dimension_numbers<[1], [0], [0], [1], [0, 0, 1, 1], [], []>} : vector<8x32xf32>, vector<32x128xf32>, vector<8x128xf32> -> vector<8x128xf32>
    %392 = arith.addf %390, %391 : vector<8x128xf32>
    %393 = vector.extract_strided_slice %392 {offsets = [0, 0], sizes = [8, 32], strides = [1, 1]} : vector<8x128xf32> to vector<8x32xf32>
    %394 = arith.negf %393 : vector<8x32xf32>
    %395 = math.exp %394 : vector<8x32xf32>
    %cst_115 = arith.constant 1.000000e+00 : f32
    %396 = vector.broadcast %cst_115 : f32 to vector<8x32xf32>
    %397 = arith.addf %396, %395 : vector<8x32xf32>
    %398 = arith.divf %396, %397 : vector<8x32xf32>
    %399 = vector.extract_strided_slice %392 {offsets = [0, 32], sizes = [8, 32], strides = [1, 1]} : vector<8x128xf32> to vector<8x32xf32>
    %400 = arith.negf %399 : vector<8x32xf32>
    %401 = math.exp %400 : vector<8x32xf32>
    %cst_116 = arith.constant 1.000000e+00 : f32
    %402 = vector.broadcast %cst_116 : f32 to vector<8x32xf32>
    %403 = arith.addf %402, %401 : vector<8x32xf32>
    %404 = arith.divf %402, %403 : vector<8x32xf32>
    %405 = vector.extract_strided_slice %392 {offsets = [0, 64], sizes = [8, 32], strides = [1, 1]} : vector<8x128xf32> to vector<8x32xf32>
    %406 = math.tanh %405 : vector<8x32xf32>
    %407 = vector.extract_strided_slice %392 {offsets = [0, 96], sizes = [8, 32], strides = [1, 1]} : vector<8x128xf32> to vector<8x32xf32>
    %408 = arith.negf %407 : vector<8x32xf32>
    %409 = math.exp %408 : vector<8x32xf32>
    %cst_117 = arith.constant 1.000000e+00 : f32
    %410 = vector.broadcast %cst_117 : f32 to vector<8x32xf32>
    %411 = arith.addf %410, %409 : vector<8x32xf32>
    %412 = arith.divf %410, %411 : vector<8x32xf32>
    %413 = arith.mulf %404, %386 : vector<8x32xf32>
    %414 = arith.mulf %398, %406 : vector<8x32xf32>
    %415 = arith.addf %413, %414 : vector<8x32xf32>
    %416 = math.tanh %415 : vector<8x32xf32>
    %417 = arith.mulf %412, %416 : vector<8x32xf32>
    %c40_118 = arith.constant 40 : index
    %c0_119 = arith.constant 0 : index
    %418 = vector.load %arg16[%c40_118, %c0_119] : memref<64x32xf32, #tpu.memory_space<vmem>>, vector<8x32xf32>
    tpu.vector_store %arg16[%c40_118, %c0_119], %417 {strides = array<i32>} : memref<64x32xf32, #tpu.memory_space<vmem>>, vector<8x32xf32>,
    %c48_120 = arith.constant 48 : index
    %c0_121 = arith.constant 0 : index
    %419 = vector.load %arg15[%c48_120, %c0_121] : memref<64x128xf32, #tpu.memory_space<vmem>>, vector<8x128xf32>
    %cst_122 = arith.constant dense<0.000000e+00> : vector<8x128xf32>
    %420 = tpu.matmul %417, %244, %cst_122 {dimension_numbers = #tpu.dot_dimension_numbers<[1], [0], [0], [1], [0, 0, 1, 1], [], []>} : vector<8x32xf32>, vector<32x128xf32>, vector<8x128xf32> -> vector<8x128xf32>
    %421 = arith.addf %419, %420 : vector<8x128xf32>
    %422 = vector.extract_strided_slice %421 {offsets = [0, 0], sizes = [8, 32], strides = [1, 1]} : vector<8x128xf32> to vector<8x32xf32>
    %423 = arith.negf %422 : vector<8x32xf32>
    %424 = math.exp %423 : vector<8x32xf32>
    %cst_123 = arith.constant 1.000000e+00 : f32
    %425 = vector.broadcast %cst_123 : f32 to vector<8x32xf32>
    %426 = arith.addf %425, %424 : vector<8x32xf32>
    %427 = arith.divf %425, %426 : vector<8x32xf32>
    %428 = vector.extract_strided_slice %421 {offsets = [0, 32], sizes = [8, 32], strides = [1, 1]} : vector<8x128xf32> to vector<8x32xf32>
    %429 = arith.negf %428 : vector<8x32xf32>
    %430 = math.exp %429 : vector<8x32xf32>
    %cst_124 = arith.constant 1.000000e+00 : f32
    %431 = vector.broadcast %cst_124 : f32 to vector<8x32xf32>
    %432 = arith.addf %431, %430 : vector<8x32xf32>
    %433 = arith.divf %431, %432 : vector<8x32xf32>
    %434 = vector.extract_strided_slice %421 {offsets = [0, 64], sizes = [8, 32], strides = [1, 1]} : vector<8x128xf32> to vector<8x32xf32>
    %435 = math.tanh %434 : vector<8x32xf32>
    %436 = vector.extract_strided_slice %421 {offsets = [0, 96], sizes = [8, 32], strides = [1, 1]} : vector<8x128xf32> to vector<8x32xf32>
    %437 = arith.negf %436 : vector<8x32xf32>
    %438 = math.exp %437 : vector<8x32xf32>
    %cst_125 = arith.constant 1.000000e+00 : f32
    %439 = vector.broadcast %cst_125 : f32 to vector<8x32xf32>
    %440 = arith.addf %439, %438 : vector<8x32xf32>
    %441 = arith.divf %439, %440 : vector<8x32xf32>
    %442 = arith.mulf %433, %415 : vector<8x32xf32>
    %443 = arith.mulf %427, %435 : vector<8x32xf32>
    %444 = arith.addf %442, %443 : vector<8x32xf32>
    %445 = math.tanh %444 : vector<8x32xf32>
    %446 = arith.mulf %441, %445 : vector<8x32xf32>
    %c48_126 = arith.constant 48 : index
    %c0_127 = arith.constant 0 : index
    %447 = vector.load %arg16[%c48_126, %c0_127] : memref<64x32xf32, #tpu.memory_space<vmem>>, vector<8x32xf32>
    tpu.vector_store %arg16[%c48_126, %c0_127], %446 {strides = array<i32>} : memref<64x32xf32, #tpu.memory_space<vmem>>, vector<8x32xf32>,
    %c56_128 = arith.constant 56 : index
    %c0_129 = arith.constant 0 : index
    %448 = vector.load %arg15[%c56_128, %c0_129] : memref<64x128xf32, #tpu.memory_space<vmem>>, vector<8x128xf32>
    %cst_130 = arith.constant dense<0.000000e+00> : vector<8x128xf32>
    %449 = tpu.matmul %446, %244, %cst_130 {dimension_numbers = #tpu.dot_dimension_numbers<[1], [0], [0], [1], [0, 0, 1, 1], [], []>} : vector<8x32xf32>, vector<32x128xf32>, vector<8x128xf32> -> vector<8x128xf32>
    %450 = arith.addf %448, %449 : vector<8x128xf32>
    %451 = vector.extract_strided_slice %450 {offsets = [0, 0], sizes = [8, 32], strides = [1, 1]} : vector<8x128xf32> to vector<8x32xf32>
    %452 = arith.negf %451 : vector<8x32xf32>
    %453 = math.exp %452 : vector<8x32xf32>
    %cst_131 = arith.constant 1.000000e+00 : f32
    %454 = vector.broadcast %cst_131 : f32 to vector<8x32xf32>
    %455 = arith.addf %454, %453 : vector<8x32xf32>
    %456 = arith.divf %454, %455 : vector<8x32xf32>
    %457 = vector.extract_strided_slice %450 {offsets = [0, 32], sizes = [8, 32], strides = [1, 1]} : vector<8x128xf32> to vector<8x32xf32>
    %458 = arith.negf %457 : vector<8x32xf32>
    %459 = math.exp %458 : vector<8x32xf32>
    %cst_132 = arith.constant 1.000000e+00 : f32
    %460 = vector.broadcast %cst_132 : f32 to vector<8x32xf32>
    %461 = arith.addf %460, %459 : vector<8x32xf32>
    %462 = arith.divf %460, %461 : vector<8x32xf32>
    %463 = vector.extract_strided_slice %450 {offsets = [0, 64], sizes = [8, 32], strides = [1, 1]} : vector<8x128xf32> to vector<8x32xf32>
    %464 = math.tanh %463 : vector<8x32xf32>
    %465 = vector.extract_strided_slice %450 {offsets = [0, 96], sizes = [8, 32], strides = [1, 1]} : vector<8x128xf32> to vector<8x32xf32>
    %466 = arith.negf %465 : vector<8x32xf32>
    %467 = math.exp %466 : vector<8x32xf32>
    %cst_133 = arith.constant 1.000000e+00 : f32
    %468 = vector.broadcast %cst_133 : f32 to vector<8x32xf32>
    %469 = arith.addf %468, %467 : vector<8x32xf32>
    %470 = arith.divf %468, %469 : vector<8x32xf32>
    %471 = arith.mulf %462, %444 : vector<8x32xf32>
    %472 = arith.mulf %456, %464 : vector<8x32xf32>
    %473 = arith.addf %471, %472 : vector<8x32xf32>
    %474 = math.tanh %473 : vector<8x32xf32>
    %475 = arith.mulf %470, %474 : vector<8x32xf32>
    %c56_134 = arith.constant 56 : index
    %c0_135 = arith.constant 0 : index
    %476 = vector.load %arg16[%c56_134, %c0_135] : memref<64x32xf32, #tpu.memory_space<vmem>>, vector<8x32xf32>
    tpu.vector_store %arg16[%c56_134, %c0_135], %475 {strides = array<i32>} : memref<64x32xf32, #tpu.memory_space<vmem>>, vector<8x32xf32>,
    %c0_136 = arith.constant 0 : index
    %c0_137 = arith.constant 0 : index
    %477 = vector.load %arg16[%c0_136, %c0_137] : memref<64x32xf32, #tpu.memory_space<vmem>>, vector<64x32xf32>
    %c0_138 = arith.constant 0 : index
    %c0_139 = arith.constant 0 : index
    %478 = vector.load %arg5[%c0_138, %c0_139] : memref<32x128xf32, #tpu.memory_space<vmem>>, vector<32x128xf32>
    %cst_140 = arith.constant dense<0.000000e+00> : vector<64x128xf32>
    %479 = tpu.matmul %477, %478, %cst_140 {dimension_numbers = #tpu.dot_dimension_numbers<[1], [0], [0], [1], [0, 0, 1, 1], [], []>} : vector<64x32xf32>, vector<32x128xf32>, vector<64x128xf32> -> vector<64x128xf32>
    %c0_141 = arith.constant 0 : index
    %c0_142 = arith.constant 0 : index
    %480 = vector.load %arg6[%c0_141, %c0_142] : memref<1x128xf32, #tpu.memory_space<vmem>>, vector<1x128xf32>
    %481 = vector.broadcast %480 : vector<1x128xf32> to vector<64x128xf32>
    %482 = arith.addf %479, %481 : vector<64x128xf32>
    %c0_143 = arith.constant 0 : index
    %c0_144 = arith.constant 0 : index
    %483 = vector.load %arg15[%c0_143, %c0_144] : memref<64x128xf32, #tpu.memory_space<vmem>>, vector<64x128xf32>
    tpu.vector_store %arg15[%c0_143, %c0_144], %482 {strides = array<i32>} : memref<64x128xf32, #tpu.memory_space<vmem>>, vector<64x128xf32>,
    %cst_145 = arith.constant 0.000000e+00 : f32
    %484 = vector.broadcast %cst_145 : f32 to vector<8x32xf32>
    %cst_146 = arith.constant 0.000000e+00 : f32
    %485 = vector.broadcast %cst_146 : f32 to vector<8x32xf32>
    %c0_147 = arith.constant 0 : index
    %c0_148 = arith.constant 0 : index
    %486 = vector.load %arg7[%c0_147, %c0_148] : memref<32x128xf32, #tpu.memory_space<vmem>>, vector<32x128xf32>
    %c0_149 = arith.constant 0 : index
    %c0_150 = arith.constant 0 : index
    %487 = vector.load %arg15[%c0_149, %c0_150] : memref<64x128xf32, #tpu.memory_space<vmem>>, vector<8x128xf32>
    %cst_151 = arith.constant dense<0.000000e+00> : vector<8x128xf32>
    %488 = tpu.matmul %484, %486, %cst_151 {dimension_numbers = #tpu.dot_dimension_numbers<[1], [0], [0], [1], [0, 0, 1, 1], [], []>} : vector<8x32xf32>, vector<32x128xf32>, vector<8x128xf32> -> vector<8x128xf32>
    %489 = arith.addf %487, %488 : vector<8x128xf32>
    %490 = vector.extract_strided_slice %489 {offsets = [0, 0], sizes = [8, 32], strides = [1, 1]} : vector<8x128xf32> to vector<8x32xf32>
    %491 = arith.negf %490 : vector<8x32xf32>
    %492 = math.exp %491 : vector<8x32xf32>
    %cst_152 = arith.constant 1.000000e+00 : f32
    %493 = vector.broadcast %cst_152 : f32 to vector<8x32xf32>
    %494 = arith.addf %493, %492 : vector<8x32xf32>
    %495 = arith.divf %493, %494 : vector<8x32xf32>
    %496 = vector.extract_strided_slice %489 {offsets = [0, 32], sizes = [8, 32], strides = [1, 1]} : vector<8x128xf32> to vector<8x32xf32>
    %497 = arith.negf %496 : vector<8x32xf32>
    %498 = math.exp %497 : vector<8x32xf32>
    %cst_153 = arith.constant 1.000000e+00 : f32
    %499 = vector.broadcast %cst_153 : f32 to vector<8x32xf32>
    %500 = arith.addf %499, %498 : vector<8x32xf32>
    %501 = arith.divf %499, %500 : vector<8x32xf32>
    %502 = vector.extract_strided_slice %489 {offsets = [0, 64], sizes = [8, 32], strides = [1, 1]} : vector<8x128xf32> to vector<8x32xf32>
    %503 = math.tanh %502 : vector<8x32xf32>
    %504 = vector.extract_strided_slice %489 {offsets = [0, 96], sizes = [8, 32], strides = [1, 1]} : vector<8x128xf32> to vector<8x32xf32>
    %505 = arith.negf %504 : vector<8x32xf32>
    %506 = math.exp %505 : vector<8x32xf32>
    %cst_154 = arith.constant 1.000000e+00 : f32
    %507 = vector.broadcast %cst_154 : f32 to vector<8x32xf32>
    %508 = arith.addf %507, %506 : vector<8x32xf32>
    %509 = arith.divf %507, %508 : vector<8x32xf32>
    %510 = arith.mulf %501, %485 : vector<8x32xf32>
    %511 = arith.mulf %495, %503 : vector<8x32xf32>
    %512 = arith.addf %510, %511 : vector<8x32xf32>
    %513 = math.tanh %512 : vector<8x32xf32>
    %514 = arith.mulf %509, %513 : vector<8x32xf32>
    %c8_155 = arith.constant 8 : index
    %c0_156 = arith.constant 0 : index
    %515 = vector.load %arg15[%c8_155, %c0_156] : memref<64x128xf32, #tpu.memory_space<vmem>>, vector<8x128xf32>
    %cst_157 = arith.constant dense<0.000000e+00> : vector<8x128xf32>
    %516 = tpu.matmul %514, %486, %cst_157 {dimension_numbers = #tpu.dot_dimension_numbers<[1], [0], [0], [1], [0, 0, 1, 1], [], []>} : vector<8x32xf32>, vector<32x128xf32>, vector<8x128xf32> -> vector<8x128xf32>
    %517 = arith.addf %515, %516 : vector<8x128xf32>
    %518 = vector.extract_strided_slice %517 {offsets = [0, 0], sizes = [8, 32], strides = [1, 1]} : vector<8x128xf32> to vector<8x32xf32>
    %519 = arith.negf %518 : vector<8x32xf32>
    %520 = math.exp %519 : vector<8x32xf32>
    %cst_158 = arith.constant 1.000000e+00 : f32
    %521 = vector.broadcast %cst_158 : f32 to vector<8x32xf32>
    %522 = arith.addf %521, %520 : vector<8x32xf32>
    %523 = arith.divf %521, %522 : vector<8x32xf32>
    %524 = vector.extract_strided_slice %517 {offsets = [0, 32], sizes = [8, 32], strides = [1, 1]} : vector<8x128xf32> to vector<8x32xf32>
    %525 = arith.negf %524 : vector<8x32xf32>
    %526 = math.exp %525 : vector<8x32xf32>
    %cst_159 = arith.constant 1.000000e+00 : f32
    %527 = vector.broadcast %cst_159 : f32 to vector<8x32xf32>
    %528 = arith.addf %527, %526 : vector<8x32xf32>
    %529 = arith.divf %527, %528 : vector<8x32xf32>
    %530 = vector.extract_strided_slice %517 {offsets = [0, 64], sizes = [8, 32], strides = [1, 1]} : vector<8x128xf32> to vector<8x32xf32>
    %531 = math.tanh %530 : vector<8x32xf32>
    %532 = vector.extract_strided_slice %517 {offsets = [0, 96], sizes = [8, 32], strides = [1, 1]} : vector<8x128xf32> to vector<8x32xf32>
    %533 = arith.negf %532 : vector<8x32xf32>
    %534 = math.exp %533 : vector<8x32xf32>
    %cst_160 = arith.constant 1.000000e+00 : f32
    %535 = vector.broadcast %cst_160 : f32 to vector<8x32xf32>
    %536 = arith.addf %535, %534 : vector<8x32xf32>
    %537 = arith.divf %535, %536 : vector<8x32xf32>
    %538 = arith.mulf %529, %512 : vector<8x32xf32>
    %539 = arith.mulf %523, %531 : vector<8x32xf32>
    %540 = arith.addf %538, %539 : vector<8x32xf32>
    %541 = math.tanh %540 : vector<8x32xf32>
    %542 = arith.mulf %537, %541 : vector<8x32xf32>
    %c16_161 = arith.constant 16 : index
    %c0_162 = arith.constant 0 : index
    %543 = vector.load %arg15[%c16_161, %c0_162] : memref<64x128xf32, #tpu.memory_space<vmem>>, vector<8x128xf32>
    %cst_163 = arith.constant dense<0.000000e+00> : vector<8x128xf32>
    %544 = tpu.matmul %542, %486, %cst_163 {dimension_numbers = #tpu.dot_dimension_numbers<[1], [0], [0], [1], [0, 0, 1, 1], [], []>} : vector<8x32xf32>, vector<32x128xf32>, vector<8x128xf32> -> vector<8x128xf32>
    %545 = arith.addf %543, %544 : vector<8x128xf32>
    %546 = vector.extract_strided_slice %545 {offsets = [0, 0], sizes = [8, 32], strides = [1, 1]} : vector<8x128xf32> to vector<8x32xf32>
    %547 = arith.negf %546 : vector<8x32xf32>
    %548 = math.exp %547 : vector<8x32xf32>
    %cst_164 = arith.constant 1.000000e+00 : f32
    %549 = vector.broadcast %cst_164 : f32 to vector<8x32xf32>
    %550 = arith.addf %549, %548 : vector<8x32xf32>
    %551 = arith.divf %549, %550 : vector<8x32xf32>
    %552 = vector.extract_strided_slice %545 {offsets = [0, 32], sizes = [8, 32], strides = [1, 1]} : vector<8x128xf32> to vector<8x32xf32>
    %553 = arith.negf %552 : vector<8x32xf32>
    %554 = math.exp %553 : vector<8x32xf32>
    %cst_165 = arith.constant 1.000000e+00 : f32
    %555 = vector.broadcast %cst_165 : f32 to vector<8x32xf32>
    %556 = arith.addf %555, %554 : vector<8x32xf32>
    %557 = arith.divf %555, %556 : vector<8x32xf32>
    %558 = vector.extract_strided_slice %545 {offsets = [0, 64], sizes = [8, 32], strides = [1, 1]} : vector<8x128xf32> to vector<8x32xf32>
    %559 = math.tanh %558 : vector<8x32xf32>
    %560 = vector.extract_strided_slice %545 {offsets = [0, 96], sizes = [8, 32], strides = [1, 1]} : vector<8x128xf32> to vector<8x32xf32>
    %561 = arith.negf %560 : vector<8x32xf32>
    %562 = math.exp %561 : vector<8x32xf32>
    %cst_166 = arith.constant 1.000000e+00 : f32
    %563 = vector.broadcast %cst_166 : f32 to vector<8x32xf32>
    %564 = arith.addf %563, %562 : vector<8x32xf32>
    %565 = arith.divf %563, %564 : vector<8x32xf32>
    %566 = arith.mulf %557, %540 : vector<8x32xf32>
    %567 = arith.mulf %551, %559 : vector<8x32xf32>
    %568 = arith.addf %566, %567 : vector<8x32xf32>
    %569 = math.tanh %568 : vector<8x32xf32>
    %570 = arith.mulf %565, %569 : vector<8x32xf32>
    %c24_167 = arith.constant 24 : index
    %c0_168 = arith.constant 0 : index
    %571 = vector.load %arg15[%c24_167, %c0_168] : memref<64x128xf32, #tpu.memory_space<vmem>>, vector<8x128xf32>
    %cst_169 = arith.constant dense<0.000000e+00> : vector<8x128xf32>
    %572 = tpu.matmul %570, %486, %cst_169 {dimension_numbers = #tpu.dot_dimension_numbers<[1], [0], [0], [1], [0, 0, 1, 1], [], []>} : vector<8x32xf32>, vector<32x128xf32>, vector<8x128xf32> -> vector<8x128xf32>
    %573 = arith.addf %571, %572 : vector<8x128xf32>
    %574 = vector.extract_strided_slice %573 {offsets = [0, 0], sizes = [8, 32], strides = [1, 1]} : vector<8x128xf32> to vector<8x32xf32>
    %575 = arith.negf %574 : vector<8x32xf32>
    %576 = math.exp %575 : vector<8x32xf32>
    %cst_170 = arith.constant 1.000000e+00 : f32
    %577 = vector.broadcast %cst_170 : f32 to vector<8x32xf32>
    %578 = arith.addf %577, %576 : vector<8x32xf32>
    %579 = arith.divf %577, %578 : vector<8x32xf32>
    %580 = vector.extract_strided_slice %573 {offsets = [0, 32], sizes = [8, 32], strides = [1, 1]} : vector<8x128xf32> to vector<8x32xf32>
    %581 = arith.negf %580 : vector<8x32xf32>
    %582 = math.exp %581 : vector<8x32xf32>
    %cst_171 = arith.constant 1.000000e+00 : f32
    %583 = vector.broadcast %cst_171 : f32 to vector<8x32xf32>
    %584 = arith.addf %583, %582 : vector<8x32xf32>
    %585 = arith.divf %583, %584 : vector<8x32xf32>
    %586 = vector.extract_strided_slice %573 {offsets = [0, 64], sizes = [8, 32], strides = [1, 1]} : vector<8x128xf32> to vector<8x32xf32>
    %587 = math.tanh %586 : vector<8x32xf32>
    %588 = vector.extract_strided_slice %573 {offsets = [0, 96], sizes = [8, 32], strides = [1, 1]} : vector<8x128xf32> to vector<8x32xf32>
    %589 = arith.negf %588 : vector<8x32xf32>
    %590 = math.exp %589 : vector<8x32xf32>
    %cst_172 = arith.constant 1.000000e+00 : f32
    %591 = vector.broadcast %cst_172 : f32 to vector<8x32xf32>
    %592 = arith.addf %591, %590 : vector<8x32xf32>
    %593 = arith.divf %591, %592 : vector<8x32xf32>
    %594 = arith.mulf %585, %568 : vector<8x32xf32>
    %595 = arith.mulf %579, %587 : vector<8x32xf32>
    %596 = arith.addf %594, %595 : vector<8x32xf32>
    %597 = math.tanh %596 : vector<8x32xf32>
    %598 = arith.mulf %593, %597 : vector<8x32xf32>
    %c32_173 = arith.constant 32 : index
    %c0_174 = arith.constant 0 : index
    %599 = vector.load %arg15[%c32_173, %c0_174] : memref<64x128xf32, #tpu.memory_space<vmem>>, vector<8x128xf32>
    %cst_175 = arith.constant dense<0.000000e+00> : vector<8x128xf32>
    %600 = tpu.matmul %598, %486, %cst_175 {dimension_numbers = #tpu.dot_dimension_numbers<[1], [0], [0], [1], [0, 0, 1, 1], [], []>} : vector<8x32xf32>, vector<32x128xf32>, vector<8x128xf32> -> vector<8x128xf32>
    %601 = arith.addf %599, %600 : vector<8x128xf32>
    %602 = vector.extract_strided_slice %601 {offsets = [0, 0], sizes = [8, 32], strides = [1, 1]} : vector<8x128xf32> to vector<8x32xf32>
    %603 = arith.negf %602 : vector<8x32xf32>
    %604 = math.exp %603 : vector<8x32xf32>
    %cst_176 = arith.constant 1.000000e+00 : f32
    %605 = vector.broadcast %cst_176 : f32 to vector<8x32xf32>
    %606 = arith.addf %605, %604 : vector<8x32xf32>
    %607 = arith.divf %605, %606 : vector<8x32xf32>
    %608 = vector.extract_strided_slice %601 {offsets = [0, 32], sizes = [8, 32], strides = [1, 1]} : vector<8x128xf32> to vector<8x32xf32>
    %609 = arith.negf %608 : vector<8x32xf32>
    %610 = math.exp %609 : vector<8x32xf32>
    %cst_177 = arith.constant 1.000000e+00 : f32
    %611 = vector.broadcast %cst_177 : f32 to vector<8x32xf32>
    %612 = arith.addf %611, %610 : vector<8x32xf32>
    %613 = arith.divf %611, %612 : vector<8x32xf32>
    %614 = vector.extract_strided_slice %601 {offsets = [0, 64], sizes = [8, 32], strides = [1, 1]} : vector<8x128xf32> to vector<8x32xf32>
    %615 = math.tanh %614 : vector<8x32xf32>
    %616 = vector.extract_strided_slice %601 {offsets = [0, 96], sizes = [8, 32], strides = [1, 1]} : vector<8x128xf32> to vector<8x32xf32>
    %617 = arith.negf %616 : vector<8x32xf32>
    %618 = math.exp %617 : vector<8x32xf32>
    %cst_178 = arith.constant 1.000000e+00 : f32
    %619 = vector.broadcast %cst_178 : f32 to vector<8x32xf32>
    %620 = arith.addf %619, %618 : vector<8x32xf32>
    %621 = arith.divf %619, %620 : vector<8x32xf32>
    %622 = arith.mulf %613, %596 : vector<8x32xf32>
    %623 = arith.mulf %607, %615 : vector<8x32xf32>
    %624 = arith.addf %622, %623 : vector<8x32xf32>
    %625 = math.tanh %624 : vector<8x32xf32>
    %626 = arith.mulf %621, %625 : vector<8x32xf32>
    %c40_179 = arith.constant 40 : index
    %c0_180 = arith.constant 0 : index
    %627 = vector.load %arg15[%c40_179, %c0_180] : memref<64x128xf32, #tpu.memory_space<vmem>>, vector<8x128xf32>
    %cst_181 = arith.constant dense<0.000000e+00> : vector<8x128xf32>
    %628 = tpu.matmul %626, %486, %cst_181 {dimension_numbers = #tpu.dot_dimension_numbers<[1], [0], [0], [1], [0, 0, 1, 1], [], []>} : vector<8x32xf32>, vector<32x128xf32>, vector<8x128xf32> -> vector<8x128xf32>
    %629 = arith.addf %627, %628 : vector<8x128xf32>
    %630 = vector.extract_strided_slice %629 {offsets = [0, 0], sizes = [8, 32], strides = [1, 1]} : vector<8x128xf32> to vector<8x32xf32>
    %631 = arith.negf %630 : vector<8x32xf32>
    %632 = math.exp %631 : vector<8x32xf32>
    %cst_182 = arith.constant 1.000000e+00 : f32
    %633 = vector.broadcast %cst_182 : f32 to vector<8x32xf32>
    %634 = arith.addf %633, %632 : vector<8x32xf32>
    %635 = arith.divf %633, %634 : vector<8x32xf32>
    %636 = vector.extract_strided_slice %629 {offsets = [0, 32], sizes = [8, 32], strides = [1, 1]} : vector<8x128xf32> to vector<8x32xf32>
    %637 = arith.negf %636 : vector<8x32xf32>
    %638 = math.exp %637 : vector<8x32xf32>
    %cst_183 = arith.constant 1.000000e+00 : f32
    %639 = vector.broadcast %cst_183 : f32 to vector<8x32xf32>
    %640 = arith.addf %639, %638 : vector<8x32xf32>
    %641 = arith.divf %639, %640 : vector<8x32xf32>
    %642 = vector.extract_strided_slice %629 {offsets = [0, 64], sizes = [8, 32], strides = [1, 1]} : vector<8x128xf32> to vector<8x32xf32>
    %643 = math.tanh %642 : vector<8x32xf32>
    %644 = vector.extract_strided_slice %629 {offsets = [0, 96], sizes = [8, 32], strides = [1, 1]} : vector<8x128xf32> to vector<8x32xf32>
    %645 = arith.negf %644 : vector<8x32xf32>
    %646 = math.exp %645 : vector<8x32xf32>
    %cst_184 = arith.constant 1.000000e+00 : f32
    %647 = vector.broadcast %cst_184 : f32 to vector<8x32xf32>
    %648 = arith.addf %647, %646 : vector<8x32xf32>
    %649 = arith.divf %647, %648 : vector<8x32xf32>
    %650 = arith.mulf %641, %624 : vector<8x32xf32>
    %651 = arith.mulf %635, %643 : vector<8x32xf32>
    %652 = arith.addf %650, %651 : vector<8x32xf32>
    %653 = math.tanh %652 : vector<8x32xf32>
    %654 = arith.mulf %649, %653 : vector<8x32xf32>
    %c48_185 = arith.constant 48 : index
    %c0_186 = arith.constant 0 : index
    %655 = vector.load %arg15[%c48_185, %c0_186] : memref<64x128xf32, #tpu.memory_space<vmem>>, vector<8x128xf32>
    %cst_187 = arith.constant dense<0.000000e+00> : vector<8x128xf32>
    %656 = tpu.matmul %654, %486, %cst_187 {dimension_numbers = #tpu.dot_dimension_numbers<[1], [0], [0], [1], [0, 0, 1, 1], [], []>} : vector<8x32xf32>, vector<32x128xf32>, vector<8x128xf32> -> vector<8x128xf32>
    %657 = arith.addf %655, %656 : vector<8x128xf32>
    %658 = vector.extract_strided_slice %657 {offsets = [0, 0], sizes = [8, 32], strides = [1, 1]} : vector<8x128xf32> to vector<8x32xf32>
    %659 = arith.negf %658 : vector<8x32xf32>
    %660 = math.exp %659 : vector<8x32xf32>
    %cst_188 = arith.constant 1.000000e+00 : f32
    %661 = vector.broadcast %cst_188 : f32 to vector<8x32xf32>
    %662 = arith.addf %661, %660 : vector<8x32xf32>
    %663 = arith.divf %661, %662 : vector<8x32xf32>
    %664 = vector.extract_strided_slice %657 {offsets = [0, 32], sizes = [8, 32], strides = [1, 1]} : vector<8x128xf32> to vector<8x32xf32>
    %665 = arith.negf %664 : vector<8x32xf32>
    %666 = math.exp %665 : vector<8x32xf32>
    %cst_189 = arith.constant 1.000000e+00 : f32
    %667 = vector.broadcast %cst_189 : f32 to vector<8x32xf32>
    %668 = arith.addf %667, %666 : vector<8x32xf32>
    %669 = arith.divf %667, %668 : vector<8x32xf32>
    %670 = vector.extract_strided_slice %657 {offsets = [0, 64], sizes = [8, 32], strides = [1, 1]} : vector<8x128xf32> to vector<8x32xf32>
    %671 = math.tanh %670 : vector<8x32xf32>
    %672 = vector.extract_strided_slice %657 {offsets = [0, 96], sizes = [8, 32], strides = [1, 1]} : vector<8x128xf32> to vector<8x32xf32>
    %673 = arith.negf %672 : vector<8x32xf32>
    %674 = math.exp %673 : vector<8x32xf32>
    %cst_190 = arith.constant 1.000000e+00 : f32
    %675 = vector.broadcast %cst_190 : f32 to vector<8x32xf32>
    %676 = arith.addf %675, %674 : vector<8x32xf32>
    %677 = arith.divf %675, %676 : vector<8x32xf32>
    %678 = arith.mulf %669, %652 : vector<8x32xf32>
    %679 = arith.mulf %663, %671 : vector<8x32xf32>
    %680 = arith.addf %678, %679 : vector<8x32xf32>
    %681 = math.tanh %680 : vector<8x32xf32>
    %682 = arith.mulf %677, %681 : vector<8x32xf32>
    %c56_191 = arith.constant 56 : index
    %c0_192 = arith.constant 0 : index
    %683 = vector.load %arg15[%c56_191, %c0_192] : memref<64x128xf32, #tpu.memory_space<vmem>>, vector<8x128xf32>
    %cst_193 = arith.constant dense<0.000000e+00> : vector<8x128xf32>
    %684 = tpu.matmul %682, %486, %cst_193 {dimension_numbers = #tpu.dot_dimension_numbers<[1], [0], [0], [1], [0, 0, 1, 1], [], []>} : vector<8x32xf32>, vector<32x128xf32>, vector<8x128xf32> -> vector<8x128xf32>
    %685 = arith.addf %683, %684 : vector<8x128xf32>
    %686 = vector.extract_strided_slice %685 {offsets = [0, 0], sizes = [8, 32], strides = [1, 1]} : vector<8x128xf32> to vector<8x32xf32>
    %687 = arith.negf %686 : vector<8x32xf32>
    %688 = math.exp %687 : vector<8x32xf32>
    %cst_194 = arith.constant 1.000000e+00 : f32
    %689 = vector.broadcast %cst_194 : f32 to vector<8x32xf32>
    %690 = arith.addf %689, %688 : vector<8x32xf32>
    %691 = arith.divf %689, %690 : vector<8x32xf32>
    %692 = vector.extract_strided_slice %685 {offsets = [0, 32], sizes = [8, 32], strides = [1, 1]} : vector<8x128xf32> to vector<8x32xf32>
    %693 = arith.negf %692 : vector<8x32xf32>
    %694 = math.exp %693 : vector<8x32xf32>
    %cst_195 = arith.constant 1.000000e+00 : f32
    %695 = vector.broadcast %cst_195 : f32 to vector<8x32xf32>
    %696 = arith.addf %695, %694 : vector<8x32xf32>
    %697 = arith.divf %695, %696 : vector<8x32xf32>
    %698 = vector.extract_strided_slice %685 {offsets = [0, 64], sizes = [8, 32], strides = [1, 1]} : vector<8x128xf32> to vector<8x32xf32>
    %699 = math.tanh %698 : vector<8x32xf32>
    %700 = vector.extract_strided_slice %685 {offsets = [0, 96], sizes = [8, 32], strides = [1, 1]} : vector<8x128xf32> to vector<8x32xf32>
    %701 = arith.negf %700 : vector<8x32xf32>
    %702 = math.exp %701 : vector<8x32xf32>
    %cst_196 = arith.constant 1.000000e+00 : f32
    %703 = vector.broadcast %cst_196 : f32 to vector<8x32xf32>
    %704 = arith.addf %703, %702 : vector<8x32xf32>
    %705 = arith.divf %703, %704 : vector<8x32xf32>
    %706 = arith.mulf %697, %680 : vector<8x32xf32>
    %707 = arith.mulf %691, %699 : vector<8x32xf32>
    %708 = arith.addf %706, %707 : vector<8x32xf32>
    %709 = math.tanh %708 : vector<8x32xf32>
    %710 = arith.mulf %705, %709 : vector<8x32xf32>
    %c0_197 = arith.constant 0 : index
    %c0_198 = arith.constant 0 : index
    %711 = vector.load %arg8[%c0_197, %c0_198] : memref<32x32xf32, #tpu.memory_space<vmem>>, vector<32x32xf32>
    %cst_199 = arith.constant dense<0.000000e+00> : vector<8x32xf32>
    %712 = tpu.matmul %710, %711, %cst_199 {dimension_numbers = #tpu.dot_dimension_numbers<[1], [0], [0], [1], [0, 0, 1, 1], [], []>} : vector<8x32xf32>, vector<32x32xf32>, vector<8x32xf32> -> vector<8x32xf32>
    %c0_200 = arith.constant 0 : index
    %c0_201 = arith.constant 0 : index
    %713 = vector.load %arg9[%c0_200, %c0_201] : memref<1x32xf32, #tpu.memory_space<vmem>>, vector<1x32xf32>
    %714 = vector.broadcast %713 : vector<1x32xf32> to vector<8x32xf32>
    %715 = arith.addf %712, %714 : vector<8x32xf32>
    %cst_202 = arith.constant 0.000000e+00 : f32
    %716 = vector.broadcast %cst_202 : f32 to vector<8x32xf32>
    %717 = arith.maximumf %715, %716 : vector<8x32xf32>
    %c0_203 = arith.constant 0 : index
    %c0_204 = arith.constant 0 : index
    %718 = vector.load %arg10[%c0_203, %c0_204] : memref<32x32xf32, #tpu.memory_space<vmem>>, vector<32x32xf32>
    %cst_205 = arith.constant dense<0.000000e+00> : vector<8x32xf32>
    %719 = tpu.matmul %717, %718, %cst_205 {dimension_numbers = #tpu.dot_dimension_numbers<[1], [0], [0], [1], [0, 0, 1, 1], [], []>} : vector<8x32xf32>, vector<32x32xf32>, vector<8x32xf32> -> vector<8x32xf32>
    %c0_206 = arith.constant 0 : index
    %c0_207 = arith.constant 0 : index
    %720 = vector.load %arg11[%c0_206, %c0_207] : memref<1x32xf32, #tpu.memory_space<vmem>>, vector<1x32xf32>
    %721 = vector.broadcast %720 : vector<1x32xf32> to vector<8x32xf32>
    %722 = arith.addf %719, %721 : vector<8x32xf32>
    %cst_208 = arith.constant 0.000000e+00 : f32
    %723 = vector.broadcast %cst_208 : f32 to vector<8x32xf32>
    %724 = arith.maximumf %722, %723 : vector<8x32xf32>
    %c0_209 = arith.constant 0 : index
    %c0_210 = arith.constant 0 : index
    %725 = vector.load %arg12[%c0_209, %c0_210] : memref<32x1xf32, #tpu.memory_space<vmem>>, vector<32x1xf32>
    %cst_211 = arith.constant dense<0.000000e+00> : vector<8x1xf32>
    %726 = tpu.matmul %724, %725, %cst_211 {dimension_numbers = #tpu.dot_dimension_numbers<[1], [0], [0], [1], [0, 0, 1, 1], [], []>} : vector<8x32xf32>, vector<32x1xf32>, vector<8x1xf32> -> vector<8x1xf32>
    %c0_212 = arith.constant 0 : index
    %c0_213 = arith.constant 0 : index
    %727 = vector.load %arg13[%c0_212, %c0_213] : memref<1x1xf32, #tpu.memory_space<vmem>>, vector<1x1xf32>
    %728 = vector.broadcast %727 : vector<1x1xf32> to vector<8x1xf32>
    %729 = arith.addf %726, %728 : vector<8x1xf32>
    %c0_214 = arith.constant 0 : index
    %c0_215 = arith.constant 0 : index
    %730 = vector.load %arg14[%c0_214, %c0_215] : memref<8x1xf32, #tpu.memory_space<vmem>>, vector<8x1xf32>
    tpu.vector_store %arg14[%c0_214, %c0_215], %729 {strides = array<i32>} : memref<8x1xf32, #tpu.memory_space<vmem>>, vector<8x1xf32>,
    return
  }
}

</mosaic_0001>

<bundles_post_ra>
// kernel: lstm_model_forward.1
= control target key start
LH: loop header
LB: loop body
LE: loop exit
PB: predicated region body
PF: predicated region fallthrough
CT: control target
= control target key end

     0   :  { %v3847_v0 = vmov 0.0   ;;  %vm3848_vm0 = vmmov 0   ;;  %s3849_s22 = smov 64   ;;  %s3850_s23 = smov 32   ;;  %vm54_vm1 = vcmask 261120   ;;  %vm3080_vm2 = vcmask 7168   ;;  %s4559_s1 = inlined_call_operand.vmem [shape: f32[32,128], index: 1, kind: input, shape index: {}]   ;;  %s4560_s0 = inlined_call_operand.vmem [shape: f32[64,128], index: 0, kind: input, shape index: {}]   ;;  %s4561_s2 = inlined_call_operand.vmem [shape: f32[32,128], index: 2, kind: input, shape index: {}]   ;;  %s4562_s4 = inlined_call_operand.vmem [shape: f32[32,128], index: 4, kind: input, shape index: {}]   ;;  %s4563_s3 = inlined_call_operand.vmem [shape: f32[1,128], index: 3, kind: input, shape index: {}]   ;;  %s4564_s5 = inlined_call_operand.vmem [shape: f32[32,128], index: 5, kind: input, shape index: {}]   ;;  %s4565_s7 = inlined_call_operand.vmem [shape: f32[32,128], index: 7, kind: input, shape index: {}]   ;;  %s4566_s6 = inlined_call_operand.vmem [shape: f32[1,128], index: 6, kind: input, shape index: {}]   ;;  %s4567_s8 = inlined_call_operand.vmem [shape: f32[32,32], index: 8, kind: input, shape index: {}]   ;;  %s4568_s10 = inlined_call_operand.vmem [shape: f32[32,32], index: 10, kind: input, shape index: {}]   ;;  %s4569_s12 = inlined_call_operand.vmem [shape: f32[32,1], index: 12, kind: input, shape index: {}]   ;;  %s4570_s9 = inlined_call_operand.vmem [shape: f32[1,32], index: 9, kind: input, shape index: {}]   ;;  %s4571_s13 = inlined_call_operand.<no memory space> [shape: f32[1,1], index: 13, kind: input, shape index: {}]   ;;  %s4572_s11 = inlined_call_operand.vmem [shape: f32[1,32], index: 11, kind: input, shape index: {}]   ;;  %s4573_s14 = inlined_call_operand.vmem [shape: f32[8,1], index: 14, kind: output, shape index: {}]  }
   0x1   :  { %3314 = vmatprep.subr.mxu0 %v3847_v0  ;;  %v3930_v1 = vld [vmem:[%s4559_s1 + $0x18] sm:$0xff]  ;;  %v3935_v2 = vld [vmem:[%s4559_s1 + $0x10] sm:$0xff]  ;;  %3322 = vmatprep.mubr.msk.f32.mxu0 %vm3848_vm0, %v3847_v0  ;;  %v3945_v3 = vld [vmem:[%s4559_s1 + $0x8] sm:$0xff] }
   0x2   :  { %3315 = vmatpush3.msra.mxu0 %v3930_v1  ;;  %3325 = vmatprep.subr.mxu1 %v3847_v0  ;;  %v3954_v4 = vld [vmem:[%s4559_s1] sm:$0xff]  ;;  %v158_v23 = vld [vmem:[%s4560_s0 + $0x8] sm:$0xff]  ;;  %v261_v41 = vld [vmem:[%s4560_s0 + $0x10] sm:$0xff] }
   0x3   :  { %3316 = vmatprep.subr.mxu0 %v3847_v0  ;;  %3326 = vmatpush3.msra.mxu1 %v3930_v1  ;;  %v53_v5 = vld [vmem:[%s4560_s0] sm:$0xff]  ;;  %v364_v59 = vld [vmem:[%s4560_s0 + $0x18] sm:$0xff] }
   0x4   :  { %3317 = vmatpush3.msra.mxu0 %v3935_v2  ;;  %3327 = vmatprep.subr.mxu1 %v3847_v0 }
   0x5   :  { %3318 = vmatprep.subr.mxu0 %v3847_v0  ;;  %3328 = vmatpush3.msra.mxu1 %v3935_v2 }
   0x6   :  { %3319 = vmatpush3.msra.mxu0 %v3945_v3  ;;  %3329 = vmatprep.subr.mxu1 %v3847_v0 }
   0x7   :  { %3320 = vmatprep.subr.mxu0 %v3847_v0  ;;  %3330 = vmatpush3.msra.mxu1 %v3945_v3 }
   0x8   :  { %3321 = vmatpush3.msra.mxu0 %v3954_v4  ;;  %3331 = vmatprep.subr.mxu1 %v3847_v0 }
   0x9   :  { %3323 = vmatmul.mubr.f32.vlgmr.msra.gmra.mxu0 %v3847_v0  ;;  %3332 = vmatpush3.msra.mxu1 %v3954_v4 }
   0xa   :  { %3333 = vmatprep.mubr.msk.f32.mxu1 %vm3848_vm0, %v3847_v0  ;;  %3336 = vmatprep.subr.mxu0 %v3847_v0 }
   0xb   :  { %3337 = vmatpush3.msra.mxu0 %v3930_v1  ;;  %3344 = vmatprep.mubr.msk.f32.mxu0 %vm3848_vm0, %v3847_v0 }
   0xc   :  { %3338 = vmatprep.subr.mxu0 %v3847_v0  ;;  %3347 = vmatprep.subr.mxu1 %v3847_v0 }
   0xd   :  { %3339 = vmatpush3.msra.mxu0 %v3935_v2 }
   0xe   :  { %3340 = vmatprep.subr.mxu0 %v3847_v0 }
   0xf   :  { %3341 = vmatpush3.msra.mxu0 %v3945_v3 }
  0x10   :  { %3342 = vmatprep.subr.mxu0 %v3847_v0 }
  0x11   :  { %3343 = vmatpush3.msra.mxu0 %v3954_v4 }
  0x12   :  { %3358 = vmatprep.subr.mxu0 %v3847_v0 }
  0xc9   :  { %v124_v6 = vpop.f32.mrf.mxu0 }
  0xca   :  { %v128_v7 = vadd.f32 %v124_v6, %v53_v5 }
  0xcb   :  { %v3324_v8 = vpop.f32.mrf.mxu0 }
  0xcc   :  { %3655 = vtanh.f32 %v128_v7  ;;  %v3086_v10 = vmul.f32 -1.442695, %v128_v7 }
  0xce   :  { %3657 = vpow2.f32 %v3086_v10 }
  0xd9   :  { %v3656_v9 = vpop.eup %3655 }
  0xda   :  { %138 = vrot.lane.b32.xlu0 %v3656_v9, %s3849_s22 }
  0xdb   :  { %v3658_v11 = vpop.eup %3657 }
  0xdc   :  { %v132_v12 = vadd.f32 1.0, %v3658_v11 }
  0xde   :  { %3659 = vrcp.f32 %v132_v12 }
  0xeb   :  { %v3660_v13 = vpop.eup %3659 }
  0xec   :  { %v136_v16 = vmul.f32 0.0, %v3660_v13 }
 0x14c   :  { %v139_v14 = vpop.permute.xlu0 %138 }
 0x14d   :  { %v141_v15 = vmul.f32 %v3660_v13, %v139_v14 }
 0x14f   :  { %143 = vrot.lane.b32.xlu0 %v141_v15, %s3850_s23 }
 0x1c1   :  { %v144_v17 = vpop.permute.xlu0 %143 }
 0x1c2   :  { %v146_v18 = vadd.f32 %v144_v17, %v136_v16 }
 0x1c4   :  { %3661 = vtanh.f32 %v146_v18 }
 0x1d1   :  { %v3662_v19 = vpop.eup %3661 }
 0x1d2   :  { %149 = vrot.lane.b32.xlu1 %v3662_v19, %s3849_s22 }
 0x244   :  { %v150_v20 = vpop.permute.xlu1 %149 }
 0x245   :  { %v152_v21 = vmul.f32 %v3660_v13, %v150_v20 }
 0x247   :  { %154 = vrot.lane.b32.xlu1 %v152_v21, %s3850_s23 }
 0x2b9   :  { %v155_v22 = vpop.permute.xlu1 %154 }
 0x2ba   :  { %157 = vst.msk [vmem:[#allocation3] sm:$0xff] %vm54_vm1, %v155_v22  ;;  %3334 = vmatmul.mubr.msk.f32.vlgmr.msra.gmra.mxu1 %vm54_vm1, %v155_v22 }
 0x2bb   :  { %3348 = vmatpush3.msra.mxu1 %v3930_v1  ;;  %3355 = vmatprep.mubr.msk.f32.mxu1 %vm3848_vm0, %v3847_v0 }
 0x2bc   :  { %3349 = vmatprep.subr.mxu1 %v3847_v0 }
 0x2bd   :  { %3350 = vmatpush3.msra.mxu1 %v3935_v2 }
 0x2be   :  { %3351 = vmatprep.subr.mxu1 %v3847_v0 }
 0x2bf   :  { %3352 = vmatpush3.msra.mxu1 %v3945_v3 }
 0x2c0   :  { %3353 = vmatprep.subr.mxu1 %v3847_v0 }
 0x2c1   :  { %3354 = vmatpush3.msra.mxu1 %v3954_v4 }
 0x2c2   :  { %3369 = vmatprep.subr.mxu1 %v3847_v0 }
 0x37a   :  { %v227_v24 = vpop.f32.mrf.mxu1 }
 0x37b   :  { %v231_v25 = vadd.f32 %v227_v24, %v158_v23 }
 0x37c   :  { %v3335_v26 = vpop.f32.mrf.mxu1 }
 0x37d   :  { %3663 = vtanh.f32 %v231_v25  ;;  %v3088_v28 = vmul.f32 -1.442695, %v231_v25 }
 0x37f   :  { %3665 = vpow2.f32 %v3088_v28 }
 0x38a   :  { %v3664_v27 = vpop.eup %3663 }
 0x38b   :  { %241 = vrot.lane.b32.xlu0 %v3664_v27, %s3849_s22 }
 0x38c   :  { %v3666_v29 = vpop.eup %3665 }
 0x38d   :  { %v235_v30 = vadd.f32 1.0, %v3666_v29 }
 0x38f   :  { %3667 = vrcp.f32 %v235_v30 }
 0x39c   :  { %v3668_v31 = vpop.eup %3667 }
 0x39d   :  { %v239_v34 = vmul.f32 %v3668_v31, %v146_v18  ;;  %v467_v18 = vld [vmem:[%s4560_s0 + $0x20] sm:$0xff] }
 0x3fd   :  { %v242_v32 = vpop.permute.xlu0 %241 }
 0x3fe   :  { %v244_v33 = vmul.f32 %v3668_v31, %v242_v32 }
 0x400   :  { %246 = vrot.lane.b32.xlu1 %v244_v33, %s3850_s23 }
 0x472   :  { %v247_v35 = vpop.permute.xlu1 %246 }
 0x473   :  { %v249_v36 = vadd.f32 %v247_v35, %v239_v34 }
 0x475   :  { %3669 = vtanh.f32 %v249_v36 }
 0x482   :  { %v3670_v37 = vpop.eup %3669 }
 0x483   :  { %252 = vrot.lane.b32.xlu0 %v3670_v37, %s3849_s22 }
 0x4f5   :  { %v253_v38 = vpop.permute.xlu0 %252 }
 0x4f6   :  { %v255_v39 = vmul.f32 %v3668_v31, %v253_v38 }
 0x4f8   :  { %257 = vrot.lane.b32.xlu1 %v255_v39, %s3850_s23 }
 0x56a   :  { %v258_v40 = vpop.permute.xlu1 %257 }
 0x56b   :  { %260 = vst.msk [vmem:[#allocation3 + $0x8] sm:$0xff] %vm54_vm1, %v258_v40  ;;  %3345 = vmatmul.mubr.msk.f32.vlgmr.msra.gmra.mxu0 %vm54_vm1, %v258_v40 }
 0x56c   :  { %3359 = vmatpush3.msra.mxu0 %v3930_v1  ;;  %3366 = vmatprep.mubr.msk.f32.mxu0 %vm3848_vm0, %v3847_v0 }
 0x56d   :  { %3360 = vmatprep.subr.mxu0 %v3847_v0 }
 0x56e   :  { %3361 = vmatpush3.msra.mxu0 %v3935_v2 }
 0x56f   :  { %3362 = vmatprep.subr.mxu0 %v3847_v0 }
 0x570   :  { %3363 = vmatpush3.msra.mxu0 %v3945_v3 }
 0x571   :  { %3364 = vmatprep.subr.mxu0 %v3847_v0 }
 0x572   :  { %3365 = vmatpush3.msra.mxu0 %v3954_v4 }
 0x573   :  { %3380 = vmatprep.subr.mxu0 %v3847_v0 }
 0x62b   :  { %v330_v42 = vpop.f32.mrf.mxu0 }
 0x62c   :  { %v334_v43 = vadd.f32 %v330_v42, %v261_v41 }
 0x62d   :  { %v3346_v44 = vpop.f32.mrf.mxu0 }
 0x62e   :  { %3671 = vtanh.f32 %v334_v43  ;;  %v3090_v46 = vmul.f32 -1.442695, %v334_v43 }
 0x630   :  { %3673 = vpow2.f32 %v3090_v46  ;;  %v890_v46 = vld [vmem:[%s4561_s2 + $0x18] sm:$0xff] }
 0x63b   :  { %v3672_v45 = vpop.eup %3671 }
 0x63c   :  { %344 = vrot.lane.b32.xlu0 %v3672_v45, %s3849_s22 }
 0x63d   :  { %v3674_v47 = vpop.eup %3673 }
 0x63e   :  { %v338_v48 = vadd.f32 1.0, %v3674_v47 }
 0x640   :  { %3675 = vrcp.f32 %v338_v48 }
 0x64d   :  { %v3676_v49 = vpop.eup %3675 }
 0x64e   :  { %v342_v52 = vmul.f32 %v3676_v49, %v249_v36 }
 0x6ae   :  { %v345_v50 = vpop.permute.xlu0 %344 }
 0x6af   :  { %v347_v51 = vmul.f32 %v3676_v49, %v345_v50 }
 0x6b1   :  { %349 = vrot.lane.b32.xlu1 %v347_v51, %s3850_s23  ;;  %v889_v51 = vld [vmem:[%s4561_s2 + $0x10] sm:$0xff] }
 0x723   :  { %v350_v53 = vpop.permute.xlu1 %349 }
 0x724   :  { %v352_v54 = vadd.f32 %v350_v53, %v342_v52  ;;  %v879_v52 = vld [vmem:[#allocation3] sm:$0xff]  ;;  %v888_v53 = vld [vmem:[%s4561_s2 + $0x8] sm:$0xff] }
 0x726   :  { %3677 = vtanh.f32 %v352_v54 }
 0x733   :  { %v3678_v55 = vpop.eup %3677 }
 0x734   :  { %355 = vrot.lane.b32.xlu0 %v3678_v55, %s3849_s22  ;;  %v880_v55 = vld [vmem:[#allocation3 + $0x8] sm:$0xff] }
 0x7a6   :  { %v356_v56 = vpop.permute.xlu0 %355 }
 0x7a7   :  { %v358_v57 = vmul.f32 %v3676_v49, %v356_v56 }
 0x7a9   :  { %360 = vrot.lane.b32.xlu1 %v358_v57, %s3850_s23 }
 0x81b   :  { %v361_v58 = vpop.permute.xlu1 %360 }
 0x81c   :  { %363 = vst.msk [vmem:[#allocation3 + $0x10] sm:$0xff] %vm54_vm1, %v361_v58  ;;  %3356 = vmatmul.mubr.msk.f32.vlgmr.msra.gmra.mxu1 %vm54_vm1, %v361_v58 }
 0x81d   :  { %3370 = vmatpush3.msra.mxu1 %v3930_v1  ;;  %3377 = vmatprep.mubr.msk.f32.mxu1 %vm3848_vm0, %v3847_v0 }
 0x81e   :  { %3371 = vmatprep.subr.mxu1 %v3847_v0 }
 0x81f   :  { %3372 = vmatpush3.msra.mxu1 %v3935_v2 }
 0x820   :  { %3373 = vmatprep.subr.mxu1 %v3847_v0 }
 0x821   :  { %3374 = vmatpush3.msra.mxu1 %v3945_v3 }
 0x822   :  { %3375 = vmatprep.subr.mxu1 %v3847_v0 }
 0x823   :  { %3376 = vmatpush3.msra.mxu1 %v3954_v4  ;;  %v881_v56 = vld [vmem:[#allocation3 + $0x10] sm:$0xff] }
 0x824   :  { %3391 = vmatprep.subr.mxu1 %v3847_v0 }
 0x8dc   :  { %v433_v60 = vpop.f32.mrf.mxu1 }
 0x8dd   :  { %v437_v61 = vadd.f32 %v433_v60, %v364_v59  ;;  %v673_v60 = vld [vmem:[%s4560_s0 + $0x30] sm:$0xff] }
 0x8de   :  { %v3357_v62 = vpop.f32.mrf.mxu1 }
 0x8df   :  { %3679 = vtanh.f32 %v437_v61  ;;  %v3092_v5 = vmul.f32 -1.442695, %v437_v61 }
 0x8e1   :  { %3681 = vpow2.f32 %v3092_v5 }
 0x8ec   :  { %v3680_v63 = vpop.eup %3679 }
 0x8ed   :  { %447 = vrot.lane.b32.xlu0 %v3680_v63, %s3849_s22 }
 0x8ee   :  { %v3682_v6 = vpop.eup %3681 }
 0x8ef   :  { %v441_v7 = vadd.f32 1.0, %v3682_v6 }
 0x8f1   :  { %3683 = vrcp.f32 %v441_v7 }
 0x8fe   :  { %v3684_v8 = vpop.eup %3683 }
 0x8ff   :  { %v445_v11 = vmul.f32 %v3684_v8, %v352_v54  ;;  %v887_v54 = vld [vmem:[%s4561_s2] sm:$0xff] }
 0x95f   :  { %v448_v9 = vpop.permute.xlu0 %447 }
 0x960   :  { %v450_v10 = vmul.f32 %v3684_v8, %v448_v9 }
 0x962   :  { %452 = vrot.lane.b32.xlu1 %v450_v10, %s3850_s23 }
 0x9d4   :  { %v453_v12 = vpop.permute.xlu1 %452 }
 0x9d5   :  { %v455_v13 = vadd.f32 %v453_v12, %v445_v11 }
 0x9d7   :  { %3685 = vtanh.f32 %v455_v13 }
 0x9e4   :  { %v3686_v14 = vpop.eup %3685 }
 0x9e5   :  { %458 = vrot.lane.b32.xlu0 %v3686_v14, %s3849_s22 }
 0xa57   :  { %v459_v15 = vpop.permute.xlu0 %458 }
 0xa58   :  { %v461_v16 = vmul.f32 %v3684_v8, %v459_v15 }
 0xa5a   :  { %463 = vrot.lane.b32.xlu1 %v461_v16, %s3850_s23  ;;  %v4113_v16 = vld [vmem:[%s4562_s4 + $0x18] sm:$0xff] }
 0xacc   :  { %v464_v17 = vpop.permute.xlu1 %463 }
 0xacd   :  { %466 = vst.msk [vmem:[#allocation3 + $0x18] sm:$0xff] %vm54_vm1, %v464_v17  ;;  %3367 = vmatmul.mubr.msk.f32.vlgmr.msra.gmra.mxu0 %vm54_vm1, %v464_v17  ;;  %v4119_v17 = vld [vmem:[%s4562_s4 + $0x10] sm:$0xff] }
 0xace   :  { %3381 = vmatpush3.msra.mxu0 %v3930_v1  ;;  %3388 = vmatprep.mubr.msk.f32.mxu0 %vm3848_vm0, %v3847_v0 }
 0xacf   :  { %3382 = vmatprep.subr.mxu0 %v3847_v0 }
 0xad0   :  { %3383 = vmatpush3.msra.mxu0 %v3935_v2 }
 0xad1   :  { %3384 = vmatprep.subr.mxu0 %v3847_v0 }
 0xad2   :  { %3385 = vmatpush3.msra.mxu0 %v3945_v3 }
 0xad3   :  { %3386 = vmatprep.subr.mxu0 %v3847_v0 }
 0xad4   :  { %3387 = vmatpush3.msra.mxu0 %v3954_v4  ;;  %v882_v57 = vld [vmem:[#allocation3 + $0x18] sm:$0xff] }
 0xad5   :  { %3402 = vmatprep.subr.mxu0 %v890_v46 }
 0xb8d   :  { %v536_v19 = vpop.f32.mrf.mxu0 }
 0xb8e   :  { %v540_v20 = vadd.f32 %v536_v19, %v467_v18  ;;  %v4126_v18 = vld [vmem:[%s4562_s4 + $0x8] sm:$0xff]  ;;  %v4133_v19 = vld [vmem:[%s4562_s4] sm:$0xff] }
 0xb8f   :  { %v3368_v21 = vpop.f32.mrf.mxu0 }
 0xb90   :  { %3687 = vtanh.f32 %v540_v20  ;;  %v3094_v23 = vmul.f32 -1.442695, %v540_v20 }
 0xb92   :  { %3689 = vpow2.f32 %v3094_v23 }
 0xb9d   :  { %v3688_v22 = vpop.eup %3687 }
 0xb9e   :  { %550 = vrot.lane.b32.xlu0 %v3688_v22, %s3849_s22 }
 0xb9f   :  { %v3690_v24 = vpop.eup %3689 }
 0xba0   :  { %v544_v25 = vadd.f32 1.0, %v3690_v24 }
 0xba2   :  { %3691 = vrcp.f32 %v544_v25 }
 0xbaf   :  { %v3692_v26 = vpop.eup %3691 }
 0xbb0   :  { %v548_v29 = vmul.f32 %v3692_v26, %v455_v13 }
 0xc10   :  { %v551_v27 = vpop.permute.xlu0 %550 }
 0xc11   :  { %v553_v28 = vmul.f32 %v3692_v26, %v551_v27 }
 0xc13   :  { %555 = vrot.lane.b32.xlu1 %v553_v28, %s3850_s23  ;;  %v4168_v28 = vld [vmem:[%s4563_s3] ss:$0 sm:$0xff] }
 0xc85   :  { %v556_v30 = vpop.permute.xlu1 %555 }
 0xc86   :  { %v558_v31 = vadd.f32 %v556_v30, %v548_v29 }
 0xc88   :  { %3693 = vtanh.f32 %v558_v31 }
 0xc95   :  { %v3694_v32 = vpop.eup %3693 }
 0xc96   :  { %561 = vrot.lane.b32.xlu0 %v3694_v32, %s3849_s22 }
 0xd08   :  { %v562_v33 = vpop.permute.xlu0 %561 }
 0xd09   :  { %v564_v34 = vmul.f32 %v3692_v26, %v562_v33 }
 0xd0b   :  { %566 = vrot.lane.b32.xlu1 %v564_v34, %s3850_s23 }
 0xd7d   :  { %v567_v35 = vpop.permute.xlu1 %566 }
 0xd7e   :  { %569 = vst.msk [vmem:[#allocation3 + $0x20] sm:$0xff] %vm54_vm1, %v567_v35  ;;  %3378 = vmatmul.mubr.msk.f32.vlgmr.msra.gmra.mxu1 %vm54_vm1, %v567_v35 }
 0xd7f   :  { %3392 = vmatpush3.msra.mxu1 %v3930_v1  ;;  %3399 = vmatprep.mubr.msk.f32.mxu1 %vm3848_vm0, %v3847_v0  ;;  %v570_v1 = vld [vmem:[%s4560_s0 + $0x28] sm:$0xff] }
 0xd80   :  { %3393 = vmatprep.subr.mxu1 %v3847_v0 }
 0xd81   :  { %3394 = vmatpush3.msra.mxu1 %v3935_v2 }
 0xd82   :  { %3395 = vmatprep.subr.mxu1 %v3847_v0 }
 0xd83   :  { %3396 = vmatpush3.msra.mxu1 %v3945_v3 }
 0xd84   :  { %3397 = vmatprep.subr.mxu1 %v3847_v0 }
 0xd85   :  { %3398 = vmatpush3.msra.mxu1 %v3954_v4  ;;  %v883_v58 = vld [vmem:[#allocation3 + $0x20] sm:$0xff] }
 0xd86   :  { %3422 = vmatprep.subr.mxu1 %v3847_v0 }
 0xe3e   :  { %v639_v36 = vpop.f32.mrf.mxu1 }
 0xe3f   :  { %v643_v37 = vadd.f32 %v639_v36, %v570_v1 }
 0xe40   :  { %v3379_v38 = vpop.f32.mrf.mxu1 }
 0xe41   :  { %3695 = vtanh.f32 %v643_v37  ;;  %v3096_v2 = vmul.f32 -1.442695, %v643_v37 }
 0xe43   :  { %3697 = vpow2.f32 %v3096_v2  ;;  %v776_v2 = vld [vmem:[%s4560_s0 + $0x38] sm:$0xff] }
 0xe4e   :  { %v3696_v39 = vpop.eup %3695 }
 0xe4f   :  { %653 = vrot.lane.b32.xlu0 %v3696_v39, %s3849_s22 }
 0xe50   :  { %v3698_v3 = vpop.eup %3697 }
 0xe51   :  { %v647_v40 = vadd.f32 1.0, %v3698_v3 }
 0xe53   :  { %3699 = vrcp.f32 %v647_v40 }
 0xe60   :  { %v3700_v41 = vpop.eup %3699 }
 0xe61   :  { %v651_v43 = vmul.f32 %v3700_v41, %v558_v31 }
 0xec1   :  { %v654_v4 = vpop.permute.xlu0 %653 }
 0xec2   :  { %v656_v42 = vmul.f32 %v3700_v41, %v654_v4 }
 0xec4   :  { %658 = vrot.lane.b32.xlu1 %v656_v42, %s3850_s23 }
 0xf36   :  { %v659_v44 = vpop.permute.xlu1 %658 }
 0xf37   :  { %v661_v45 = vadd.f32 %v659_v44, %v651_v43 }
 0xf39   :  { %3701 = vtanh.f32 %v661_v45 }
 0xf46   :  { %v3702_v47 = vpop.eup %3701 }
 0xf47   :  { %664 = vrot.lane.b32.xlu0 %v3702_v47, %s3849_s22 }
 0xfb9   :  { %v665_v48 = vpop.permute.xlu0 %664 }
 0xfba   :  { %v667_v49 = vmul.f32 %v3700_v41, %v665_v48 }
 0xfbc   :  { %669 = vrot.lane.b32.xlu1 %v667_v49, %s3850_s23 }
0x102e   :  { %v670_v50 = vpop.permute.xlu1 %669 }
0x102f   :  { %672 = vst.msk [vmem:[#allocation3 + $0x28] sm:$0xff] %vm54_vm1, %v670_v50  ;;  %3389 = vmatmul.mubr.msk.f32.vlgmr.msra.gmra.mxu0 %vm54_vm1, %v670_v50 }
0x1030   :  { %3403 = vmatpush3.msra.mxu0 %v890_v46  ;;  %3410 = vmatprep.mubr.msk.f32.mxu0 %vm54_vm1, %v879_v52 }
0x1031   :  { %3404 = vmatprep.subr.mxu0 %v889_v51 }
0x1032   :  { %3405 = vmatpush3.msra.mxu0 %v889_v51 }
0x1033   :  { %3406 = vmatprep.subr.mxu0 %v888_v53 }
0x1034   :  { %3407 = vmatpush3.msra.mxu0 %v888_v53 }
0x1035   :  { %3408 = vmatprep.subr.mxu0 %v887_v54 }
0x1036   :  { %3409 = vmatpush3.msra.mxu0 %v887_v54  ;;  %v884_v59 = vld [vmem:[#allocation3 + $0x28] sm:$0xff] }
0x1037   :  { %3411 = vmatmul.mubr.msk.f32.vlgmr.msra.gmra.mxu0 %vm54_vm1, %v880_v55  ;;  %3444 = vmatprep.subr.mxu0 %v3847_v0 }
0x1038   :  { %3413 = vmatprep.mubr.msk.f32.mxu0 %vm54_vm1, %v881_v56  ;;  %3445 = vmatpush3.msra.mxu0 %v4113_v16 }
0x1039   :  { %3446 = vmatprep.subr.mxu0 %v3847_v0 }
0x103a   :  { %3447 = vmatpush3.msra.mxu0 %v4119_v17 }
0x103b   :  { %3414 = vmatmul.mubr.msk.f32.gmra.mxu0 %vm54_vm1, %v882_v57  ;;  %3448 = vmatprep.subr.mxu0 %v3847_v0 }
0x103c   :  { %3416 = vmatprep.mubr.msk.f32.mxu0 %vm54_vm1, %v883_v58  ;;  %3449 = vmatpush3.msra.mxu0 %v4126_v18 }
0x103d   :  { %3450 = vmatprep.subr.mxu0 %v3847_v0 }
0x103e   :  { %3451 = vmatpush3.msra.mxu0 %v4133_v19 }
0x103f   :  { %3417 = vmatmul.mubr.msk.f32.gmra.mxu0 %vm54_vm1, %v884_v59  ;;  %3466 = vmatprep.subr.mxu0 %v3847_v0 }
0x10ef   :  { %v742_v61 = vpop.f32.mrf.mxu0 }
0x10f0   :  { %v746_v62 = vadd.f32 %v742_v61, %v673_v60 }
0x10f1   :  { %v3390_v63 = vpop.f32.mrf.mxu0 }
0x10f2   :  { %3703 = vtanh.f32 %v746_v62  ;;  %v3098_v6 = vmul.f32 -1.442695, %v746_v62 }
0x10f4   :  { %3705 = vpow2.f32 %v3098_v6 }
0x10f7   :  { %v4163_v24 = vpop.f32.mrf.mxu0 }
0x10f8   :  { %v994_v58 = vadd.f32 %v4163_v24, %v4168_v28 }
0x10f9   :  { %v988_v27 = vpop.f32.mrf.mxu0 }
0x10fa   :  { %v989_v29 = vadd.f32 %v4168_v28, %v988_v27 }
0x10ff   :  { %v3704_v5 = vpop.eup %3703 }
0x1100   :  { %756 = vrot.lane.b32.xlu0 %v3704_v5, %s3849_s22 }
0x1101   :  { %v3706_v7 = vpop.eup %3705 }
0x1102   :  { %v750_v8 = vadd.f32 1.0, %v3706_v7 }
0x1104   :  { %3707 = vrcp.f32 %v750_v8 }
0x1111   :  { %v3708_v9 = vpop.eup %3707 }
0x1112   :  { %v754_v12 = vmul.f32 %v3708_v9, %v661_v45 }
0x1172   :  { %v757_v10 = vpop.permute.xlu0 %756 }
0x1173   :  { %v759_v11 = vmul.f32 %v3708_v9, %v757_v10 }
0x1175   :  { %761 = vrot.lane.b32.xlu1 %v759_v11, %s3850_s23 }
0x11e7   :  { %v762_v13 = vpop.permute.xlu1 %761 }
0x11e8   :  { %v4106_v14 = vadd.f32 %v762_v13, %v754_v12 }
0x11ea   :  { %3709 = vtanh.f32 %v4106_v14 }
0x11f7   :  { %v3710_v15 = vpop.eup %3709 }
0x11f8   :  { %767 = vrot.lane.b32.xlu0 %v3710_v15, %s3849_s22 }
0x126a   :  { %v768_v20 = vpop.permute.xlu0 %767 }
0x126b   :  { %v770_v21 = vmul.f32 %v3708_v9, %v768_v20 }
0x126d   :  { %772 = vrot.lane.b32.xlu1 %v770_v21, %s3850_s23 }
0x12df   :  { %v773_v22 = vpop.permute.xlu1 %772 }
0x12e0   :  { %775 = vst.msk [vmem:[#allocation3 + $0x30] sm:$0xff] %vm54_vm1, %v773_v22  ;;  %3400 = vmatmul.mubr.msk.f32.vlgmr.msra.gmra.mxu1 %vm54_vm1, %v773_v22 }
0x12e1   :  { %3423 = vmatpush3.msra.mxu1 %v4113_v16  ;;  %3430 = vmatprep.mubr.msk.f32.mxu1 %vm3848_vm0, %v3847_v0 }
0x12e2   :  { %3424 = vmatprep.subr.mxu1 %v3847_v0 }
0x12e3   :  { %3425 = vmatpush3.msra.mxu1 %v4119_v17 }
0x12e4   :  { %3426 = vmatprep.subr.mxu1 %v3847_v0 }
0x12e5   :  { %3427 = vmatpush3.msra.mxu1 %v4126_v18 }
0x12e6   :  { %3428 = vmatprep.subr.mxu1 %v3847_v0 }
0x12e7   :  { %3429 = vmatpush3.msra.mxu1 %v4133_v19  ;;  %v885_v23 = vld [vmem:[#allocation3 + $0x30] sm:$0xff] }
0x12e8   :  { %3431 = vmatmul.mubr.f32.vlgmr.msra.gmra.mxu1 %v3847_v0  ;;  %3419 = vmatprep.mubr.msk.f32.mxu0 %vm54_vm1, %v885_v23  ;;  %v3415_v23 = vpop.f32.mrf.mxu0 }
0x12e9   :  { %3433 = vmatprep.subr.mxu1 %v3847_v0  ;;  %3441 = vmatprep.mubr.msk.f32.mxu1 %vm3848_vm0, %v3847_v0 }
0x12ea   :  { %3434 = vmatpush3.msra.mxu1 %v4113_v16  ;;  %v998_v24 = vpop.f32.mrf.mxu0 }
0x12eb   :  { %3435 = vmatprep.subr.mxu1 %v3847_v0 }
0x12ec   :  { %3436 = vmatpush3.msra.mxu1 %v4119_v17 }
0x12ed   :  { %3437 = vmatprep.subr.mxu1 %v3847_v0 }
0x12ee   :  { %3438 = vmatpush3.msra.mxu1 %v4126_v18 }
0x12ef   :  { %3439 = vmatprep.subr.mxu1 %v3847_v0 }
0x12f0   :  { %3440 = vmatpush3.msra.mxu1 %v4133_v19 }
0x12f1   :  { %3455 = vmatprep.subr.mxu1 %v3847_v0 }
0x13a0   :  { %v845_v25 = vpop.f32.mrf.mxu1 }
0x13a1   :  { %v849_v41 = vadd.f32 %v845_v25, %v776_v2  ;;  %v4217_v25 = vpop.f32.mrf.mxu0 }
0x13a2   :  { %v3401_v26 = vpop.f32.mrf.mxu1 }
0x13a3   :  { %v3100_v43 = vmul.f32 -1.442695, %v849_v41  ;;  %v4219_v26 = vpop.f32.mrf.mxu0 }
0x13a8   :  { %v1106_v30 = vpop.f32.mrf.mxu1 }
0x13a9   :  { %v1110_v31 = vadd.f32 %v1106_v30, %v989_v29  ;;  %v999_v30 = vadd.f32 %v4168_v28, %v998_v24 }
0x13aa   :  { %v3432_v32 = vpop.f32.mrf.mxu1 }
0x13ab   :  { %3711 = vtanh.f32 %v1110_v31  ;;  %v3110_v34 = vmul.f32 -1.442695, %v1110_v31 }
0x13ad   :  { %3713 = vpow2.f32 %v3110_v34 }
0x13b8   :  { %v3712_v33 = vpop.eup %3711 }
0x13b9   :  { %1120 = vrot.lane.b32.xlu0 %v3712_v33, %s3849_s22 }
0x13ba   :  { %v3714_v35 = vpop.eup %3713 }
0x13bb   :  { %v1114_v1 = vadd.f32 1.0, %v3714_v35 }
0x13bd   :  { %3715 = vrcp.f32 %v1114_v1 }
0x13ca   :  { %v3716_v36 = vpop.eup %3715 }
0x13cb   :  { %v1118_v39 = vmul.f32 0.0, %v3716_v36 }
0x142b   :  { %v1121_v37 = vpop.permute.xlu0 %1120 }
0x142c   :  { %v1123_v38 = vmul.f32 %v3716_v36, %v1121_v37 }
0x142e   :  { %1125 = vrot.lane.b32.xlu1 %v1123_v38, %s3850_s23 }
0x14a0   :  { %v1126_v3 = vpop.permute.xlu1 %1125 }
0x14a1   :  { %v1128_v40 = vadd.f32 %v1126_v3, %v1118_v39 }
0x14a3   :  { %3717 = vtanh.f32 %v1128_v40 }
0x14a4   :  { %3719 = vtanh.f32 %v849_v41 }
0x14a5   :  { %3721 = vpow2.f32 %v3100_v43 }
0x14b0   :  { %v3718_v4 = vpop.eup %3717 }
0x14b1   :  { %1131 = vrot.lane.b32.xlu0 %v3718_v4, %s3849_s22  ;;  %v3720_v42 = vpop.eup %3719 }
0x14b2   :  { %v3722_v44 = vpop.eup %3721 }
0x14b3   :  { %v853_v45 = vadd.f32 1.0, %v3722_v44  ;;  %v1004_v44 = vadd.f32 %v3415_v23, %v4168_v28 }
0x14b5   :  { %859 = vrot.lane.b32.xlu0 %v3720_v42, %s3849_s22  ;;  %3723 = vrcp.f32 %v853_v45 }
0x14c2   :  { %v3724_v48 = vpop.eup %3723 }
0x14c3   :  { %v857_v52 = vmul.f32 %v3724_v48, %v4106_v14 }
0x1523   :  { %v1132_v46 = vpop.permute.xlu0 %1131 }
0x1524   :  { %v1134_v47 = vmul.f32 %v3716_v36, %v1132_v46 }
0x1526   :  { %1136 = vrot.lane.b32.xlu1 %v1134_v47, %s3850_s23 }
0x1527   :  { %v860_v49 = vpop.permute.xlu0 %859 }
0x1528   :  { %v862_v50 = vmul.f32 %v3724_v48, %v860_v49 }
0x152a   :  { %864 = vrot.lane.b32.xlu0 %v862_v50, %s3850_s23 }
0x1598   :  { %v1137_v51 = vpop.permute.xlu1 %1136 }
0x1599   :  { %1139 = vst.msk [vmem:[#allocation3] sm:$0xff] %vm54_vm1, %v1137_v51  ;;  %3442 = vmatmul.mubr.msk.f32.vlgmr.msra.gmra.mxu1 %vm54_vm1, %v1137_v51 }
0x159a   :  { %3456 = vmatpush3.msra.mxu1 %v4113_v16  ;;  %3463 = vmatprep.mubr.msk.f32.mxu1 %vm3848_vm0, %v3847_v0 }
0x159b   :  { %3457 = vmatprep.subr.mxu1 %v3847_v0 }
0x159c   :  { %v865_v53 = vpop.permute.xlu0 %864  ;;  %3458 = vmatpush3.msra.mxu1 %v4119_v17 }
0x159d   :  { %v867_v54 = vadd.f32 %v865_v53, %v857_v52  ;;  %3459 = vmatprep.subr.mxu1 %v3847_v0 }
0x159e   :  { %3460 = vmatpush3.msra.mxu1 %v4126_v18 }
0x159f   :  { %3725 = vtanh.f32 %v867_v54  ;;  %3461 = vmatprep.subr.mxu1 %v3847_v0 }
0x15a0   :  { %3462 = vmatpush3.msra.mxu1 %v4133_v19 }
0x15a1   :  { %3477 = vmatprep.subr.mxu1 %v3847_v0 }
0x15ac   :  { %v3726_v55 = vpop.eup %3725 }
0x15ad   :  { %870 = vrot.lane.b32.xlu0 %v3726_v55, %s3849_s22 }
0x161f   :  { %v871_v56 = vpop.permute.xlu0 %870 }
0x1620   :  { %v873_v57 = vmul.f32 %v3724_v48, %v871_v56 }
0x1622   :  { %875 = vrot.lane.b32.xlu0 %v873_v57, %s3850_s23 }
0x1659   :  { %v1209_v59 = vpop.f32.mrf.mxu1 }
0x165a   :  { %v1213_v60 = vadd.f32 %v1209_v59, %v994_v58 }
0x165b   :  { %v3443_v61 = vpop.f32.mrf.mxu1 }
0x165c   :  { %3727 = vtanh.f32 %v1213_v60  ;;  %v3112_v6 = vmul.f32 -1.442695, %v1213_v60 }
0x165e   :  { %3729 = vpow2.f32 %v3112_v6 }
0x1669   :  { %v3728_v62 = vpop.eup %3727 }
0x166a   :  { %1223 = vrot.lane.b32.xlu1 %v3728_v62, %s3849_s22  ;;  %v1009_v62 = vadd.f32 %v4168_v28, %v4219_v26 }
0x166b   :  { %v3730_v7 = vpop.eup %3729 }
0x166c   :  { %v1217_v8 = vadd.f32 1.0, %v3730_v7 }
0x166e   :  { %3731 = vrcp.f32 %v1217_v8 }
0x167b   :  { %v3732_v9 = vpop.eup %3731 }
0x167c   :  { %v1221_v12 = vmul.f32 %v3732_v9, %v1128_v40 }
0x1694   :  { %v876_v63 = vpop.permute.xlu0 %875 }
0x1695   :  { %878 = vst.msk [vmem:[#allocation3 + $0x38] sm:$0xff] %vm54_vm1, %v876_v63 }
0x169c   :  { %v886_v5 = vld [vmem:[#allocation3 + $0x38] sm:$0xff] }
0x169d   :  { %3420 = vmatmul.mubr.msk.f32.gmra.mxu0 %vm54_vm1, %v886_v5 }
0x169e   :  { %3452 = vmatprep.mubr.msk.f32.mxu0 %vm3848_vm0, %v3847_v0 }
0x16dc   :  { %v1224_v10 = vpop.permute.xlu1 %1223 }
0x16dd   :  { %v1226_v11 = vmul.f32 %v3732_v9, %v1224_v10 }
0x16df   :  { %1228 = vrot.lane.b32.xlu1 %v1226_v11, %s3850_s23 }
0x1751   :  { %v1229_v13 = vpop.permute.xlu1 %1228 }
0x1752   :  { %v1231_v14 = vadd.f32 %v1229_v13, %v1221_v12 }
0x1754   :  { %3733 = vtanh.f32 %v1231_v14 }
0x175d   :  { %v4221_v27 = vpop.f32.mrf.mxu0 }
0x175f   :  { %v4223_v29 = vpop.f32.mrf.mxu0 }
0x1761   :  { %v3734_v15 = vpop.eup %3733 }
0x1762   :  { %1234 = vrot.lane.b32.xlu1 %v3734_v15, %s3849_s22 }
0x17d4   :  { %v1235_v20 = vpop.permute.xlu1 %1234 }
0x17d5   :  { %v1237_v21 = vmul.f32 %v3732_v9, %v1235_v20 }
0x17d7   :  { %1239 = vrot.lane.b32.xlu1 %v1237_v21, %s3850_s23 }
0x1849   :  { %v1240_v22 = vpop.permute.xlu1 %1239 }
0x184a   :  { %1242 = vst.msk [vmem:[#allocation3 + $0x8] sm:$0xff] %vm54_vm1, %v1240_v22  ;;  %3453 = vmatmul.mubr.msk.f32.vlgmr.msra.gmra.mxu0 %vm54_vm1, %v1240_v22 }
0x184b   :  { %3467 = vmatpush3.msra.mxu0 %v4113_v16  ;;  %3474 = vmatprep.mubr.msk.f32.mxu0 %vm3848_vm0, %v3847_v0 }
0x184c   :  { %3468 = vmatprep.subr.mxu0 %v3847_v0 }
0x184d   :  { %3469 = vmatpush3.msra.mxu0 %v4119_v17 }
0x184e   :  { %3470 = vmatprep.subr.mxu0 %v3847_v0 }
0x184f   :  { %3471 = vmatpush3.msra.mxu0 %v4126_v18 }
0x1850   :  { %3472 = vmatprep.subr.mxu0 %v3847_v0 }
0x1851   :  { %3473 = vmatpush3.msra.mxu0 %v4133_v19 }
0x1852   :  { %3488 = vmatprep.subr.mxu0 %v3847_v0 }
0x190a   :  { %v1312_v31 = vpop.f32.mrf.mxu0 }
0x190b   :  { %v1316_v32 = vadd.f32 %v1312_v31, %v999_v30 }
0x190c   :  { %v3454_v33 = vpop.f32.mrf.mxu0 }
0x190d   :  { %3735 = vtanh.f32 %v1316_v32  ;;  %v3114_v35 = vmul.f32 -1.442695, %v1316_v32 }
0x190f   :  { %3737 = vpow2.f32 %v3114_v35 }
0x191a   :  { %v3736_v34 = vpop.eup %3735 }
0x191b   :  { %1326 = vrot.lane.b32.xlu0 %v3736_v34, %s3849_s22 }
0x191c   :  { %v3738_v1 = vpop.eup %3737 }
0x191d   :  { %v1320_v36 = vadd.f32 1.0, %v3738_v1 }
0x191f   :  { %3739 = vrcp.f32 %v1320_v36 }
0x192c   :  { %v3740_v37 = vpop.eup %3739 }
0x192d   :  { %v1324_v2 = vmul.f32 %v3740_v37, %v1231_v14 }
0x198d   :  { %v1327_v38 = vpop.permute.xlu0 %1326 }
0x198e   :  { %v1329_v39 = vmul.f32 %v3740_v37, %v1327_v38 }
0x1990   :  { %1331 = vrot.lane.b32.xlu1 %v1329_v39, %s3850_s23 }
0x1a02   :  { %v1332_v3 = vpop.permute.xlu1 %1331 }
0x1a03   :  { %v1334_v40 = vadd.f32 %v1332_v3, %v1324_v2 }
0x1a05   :  { %3741 = vtanh.f32 %v1334_v40 }
0x1a12   :  { %v3742_v41 = vpop.eup %3741 }
0x1a13   :  { %1337 = vrot.lane.b32.xlu0 %v3742_v41, %s3849_s22  ;;  %v1861_v41 = vld [vmem:[#allocation3] sm:$0xff] }
0x1a85   :  { %v1338_v4 = vpop.permute.xlu0 %1337 }
0x1a86   :  { %v1340_v42 = vmul.f32 %v3740_v37, %v1338_v4  ;;  %v1872_v37 = vld [vmem:[%s4564_s5 + $0x18] sm:$0xff]  ;;  %v1870_v4 = vld [vmem:[%s4564_s5 + $0x8] sm:$0xff] }
0x1a88   :  { %1342 = vrot.lane.b32.xlu1 %v1340_v42, %s3850_s23  ;;  %v1869_v42 = vld [vmem:[%s4564_s5] sm:$0xff] }
0x1afa   :  { %v1343_v43 = vpop.permute.xlu1 %1342 }
0x1afb   :  { %1345 = vst.msk [vmem:[#allocation3 + $0x10] sm:$0xff] %vm54_vm1, %v1343_v43  ;;  %3464 = vmatmul.mubr.msk.f32.vlgmr.msra.gmra.mxu1 %vm54_vm1, %v1343_v43  ;;  %v1862_v43 = vld [vmem:[#allocation3 + $0x8] sm:$0xff] }
0x1afc   :  { %3478 = vmatpush3.msra.mxu1 %v4113_v16  ;;  %3485 = vmatprep.mubr.msk.f32.mxu1 %vm3848_vm0, %v3847_v0 }
0x1afd   :  { %3479 = vmatprep.subr.mxu1 %v3847_v0 }
0x1afe   :  { %3480 = vmatpush3.msra.mxu1 %v4119_v17 }
0x1aff   :  { %3481 = vmatprep.subr.mxu1 %v3847_v0 }
0x1b00   :  { %3482 = vmatpush3.msra.mxu1 %v4126_v18 }
0x1b01   :  { %3483 = vmatprep.subr.mxu1 %v3847_v0 }
0x1b02   :  { %3484 = vmatpush3.msra.mxu1 %v4133_v19 }
0x1b03   :  { %3499 = vmatprep.subr.mxu1 %v3847_v0 }
0x1bbb   :  { %v1415_v45 = vpop.f32.mrf.mxu1 }
0x1bbc   :  { %v1419_v46 = vadd.f32 %v1415_v45, %v1004_v44  ;;  %v1863_v44 = vld [vmem:[#allocation3 + $0x10] sm:$0xff] }
0x1bbd   :  { %v3465_v47 = vpop.f32.mrf.mxu1 }
0x1bbe   :  { %3743 = vtanh.f32 %v1419_v46  ;;  %v3116_v49 = vmul.f32 -1.442695, %v1419_v46 }
0x1bc0   :  { %3745 = vpow2.f32 %v3116_v49 }
0x1bcb   :  { %v3744_v48 = vpop.eup %3743 }
0x1bcc   :  { %1429 = vrot.lane.b32.xlu0 %v3744_v48, %s3849_s22  ;;  %v1019_v48 = vadd.f32 %v4168_v28, %v4223_v29 }
0x1bcd   :  { %v3746_v50 = vpop.eup %3745 }
0x1bce   :  { %v1423_v51 = vadd.f32 1.0, %v3746_v50 }
0x1bd0   :  { %3747 = vrcp.f32 %v1423_v51 }
0x1bdd   :  { %v3748_v52 = vpop.eup %3747 }
0x1bde   :  { %v1427_v55 = vmul.f32 %v3748_v52, %v1334_v40  ;;  %v1871_v40 = vld [vmem:[%s4564_s5 + $0x10] sm:$0xff] }
0x1c3e   :  { %v1430_v53 = vpop.permute.xlu0 %1429 }
0x1c3f   :  { %v1432_v54 = vmul.f32 %v3748_v52, %v1430_v53 }
0x1c41   :  { %1434 = vrot.lane.b32.xlu1 %v1432_v54, %s3850_s23 }
0x1cb3   :  { %v1435_v56 = vpop.permute.xlu1 %1434 }
0x1cb4   :  { %v1437_v57 = vadd.f32 %v1435_v56, %v1427_v55 }
0x1cb6   :  { %3749 = vtanh.f32 %v1437_v57 }
0x1cc3   :  { %v3750_v58 = vpop.eup %3749 }
0x1cc4   :  { %1440 = vrot.lane.b32.xlu0 %v3750_v58, %s3849_s22 }
0x1d36   :  { %v1441_v59 = vpop.permute.xlu0 %1440 }
0x1d37   :  { %v1443_v60 = vmul.f32 %v3748_v52, %v1441_v59 }
0x1d39   :  { %1445 = vrot.lane.b32.xlu1 %v1443_v60, %s3850_s23 }
0x1dab   :  { %v1446_v61 = vpop.permute.xlu1 %1445 }
0x1dac   :  { %1448 = vst.msk [vmem:[#allocation3 + $0x18] sm:$0xff] %vm54_vm1, %v1446_v61  ;;  %3475 = vmatmul.mubr.msk.f32.vlgmr.msra.gmra.mxu0 %vm54_vm1, %v1446_v61 }
0x1dad   :  { %3489 = vmatpush3.msra.mxu0 %v4113_v16  ;;  %3496 = vmatprep.mubr.msk.f32.mxu0 %vm3848_vm0, %v3847_v0 }
0x1dae   :  { %3490 = vmatprep.subr.mxu0 %v3847_v0 }
0x1daf   :  { %3491 = vmatpush3.msra.mxu0 %v4119_v17 }
0x1db0   :  { %3492 = vmatprep.subr.mxu0 %v3847_v0 }
0x1db1   :  { %3493 = vmatpush3.msra.mxu0 %v4126_v18 }
0x1db2   :  { %3494 = vmatprep.subr.mxu0 %v3847_v0 }
0x1db3   :  { %3495 = vmatpush3.msra.mxu0 %v4133_v19  ;;  %v1864_v45 = vld [vmem:[#allocation3 + $0x18] sm:$0xff] }
0x1db4   :  { %3510 = vmatprep.subr.mxu0 %v1872_v37 }
0x1e6c   :  { %v1518_v63 = vpop.f32.mrf.mxu0 }
0x1e6d   :  { %v1522_v5 = vadd.f32 %v1518_v63, %v1009_v62  ;;  %v4314_v62 = vld [vmem:[%s4565_s7 + $0x18] sm:$0xff]  ;;  %v4320_v63 = vld [vmem:[%s4565_s7 + $0x10] sm:$0xff] }
0x1e6e   :  { %v3476_v6 = vpop.f32.mrf.mxu0 }
0x1e6f   :  { %3751 = vtanh.f32 %v1522_v5  ;;  %v3118_v8 = vmul.f32 -1.442695, %v1522_v5  ;;  %v4327_v5 = vld [vmem:[%s4565_s7 + $0x8] sm:$0xff]  ;;  %v4334_v6 = vld [vmem:[%s4565_s7] sm:$0xff] }
0x1e71   :  { %3753 = vpow2.f32 %v3118_v8 }
0x1e7c   :  { %v3752_v7 = vpop.eup %3751 }
0x1e7d   :  { %1532 = vrot.lane.b32.xlu0 %v3752_v7, %s3849_s22 }
0x1e7e   :  { %v3754_v9 = vpop.eup %3753 }
0x1e7f   :  { %v1526_v10 = vadd.f32 1.0, %v3754_v9 }
0x1e81   :  { %3755 = vrcp.f32 %v1526_v10 }
0x1e8e   :  { %v3756_v11 = vpop.eup %3755 }
0x1e8f   :  { %v1530_v14 = vmul.f32 %v3756_v11, %v1437_v57 }
0x1eef   :  { %v1533_v12 = vpop.permute.xlu0 %1532 }
0x1ef0   :  { %v1535_v13 = vmul.f32 %v3756_v11, %v1533_v12 }
0x1ef2   :  { %1537 = vrot.lane.b32.xlu1 %v1535_v13, %s3850_s23 }
0x1f64   :  { %v1538_v15 = vpop.permute.xlu1 %1537 }
0x1f65   :  { %v1540_v20 = vadd.f32 %v1538_v15, %v1530_v14 }
0x1f67   :  { %3757 = vtanh.f32 %v1540_v20 }
0x1f74   :  { %v3758_v21 = vpop.eup %3757 }
0x1f75   :  { %1543 = vrot.lane.b32.xlu0 %v3758_v21, %s3849_s22  ;;  %v4371_v21 = vld [vmem:[%s4566_s6] ss:$0 sm:$0xff] }
0x1fe7   :  { %v1544_v22 = vpop.permute.xlu0 %1543 }
0x1fe8   :  { %v1546_v23 = vmul.f32 %v3756_v11, %v1544_v22  ;;  %v1024_v11 = vadd.f32 %v4221_v27, %v4168_v28 }
0x1fea   :  { %1548 = vrot.lane.b32.xlu1 %v1546_v23, %s3850_s23 }
0x205c   :  { %v1549_v24 = vpop.permute.xlu1 %1548 }
0x205d   :  { %1551 = vst.msk [vmem:[#allocation3 + $0x20] sm:$0xff] %vm54_vm1, %v1549_v24  ;;  %3486 = vmatmul.mubr.msk.f32.vlgmr.msra.gmra.mxu1 %vm54_vm1, %v1549_v24 }
0x205e   :  { %3500 = vmatpush3.msra.mxu1 %v4113_v16  ;;  %3507 = vmatprep.mubr.msk.f32.mxu1 %vm3848_vm0, %v3847_v0  ;;  %v1014_v16 = vadd.f32 %v4217_v25, %v4168_v28 }
0x205f   :  { %3501 = vmatprep.subr.mxu1 %v3847_v0 }
0x2060   :  { %3502 = vmatpush3.msra.mxu1 %v4119_v17 }
0x2061   :  { %3503 = vmatprep.subr.mxu1 %v3847_v0 }
0x2062   :  { %3504 = vmatpush3.msra.mxu1 %v4126_v18 }
0x2063   :  { %3505 = vmatprep.subr.mxu1 %v3847_v0 }
0x2064   :  { %3506 = vmatpush3.msra.mxu1 %v4133_v19  ;;  %v1865_v46 = vld [vmem:[#allocation3 + $0x20] sm:$0xff] }
0x2065   :  { %3530 = vmatprep.subr.mxu1 %v3847_v0 }
0x211d   :  { %v1621_v26 = vpop.f32.mrf.mxu1 }
0x211e   :  { %v1625_v30 = vadd.f32 %v1621_v26, %v1014_v16 }
0x211f   :  { %v3487_v31 = vpop.f32.mrf.mxu1 }
0x2120   :  { %3759 = vtanh.f32 %v1625_v30  ;;  %v3120_v17 = vmul.f32 -1.442695, %v1625_v30 }
0x2122   :  { %3761 = vpow2.f32 %v3120_v17 }
0x212d   :  { %v3760_v32 = vpop.eup %3759 }
0x212e   :  { %1635 = vrot.lane.b32.xlu0 %v3760_v32, %s3849_s22 }
0x212f   :  { %v3762_v33 = vpop.eup %3761 }
0x2130   :  { %v1629_v18 = vadd.f32 1.0, %v3762_v33 }
0x2132   :  { %3763 = vrcp.f32 %v1629_v18 }
0x213f   :  { %v3764_v34 = vpop.eup %3763 }
0x2140   :  { %v1633_v1 = vmul.f32 %v3764_v34, %v1540_v20 }
0x21a0   :  { %v1636_v35 = vpop.permute.xlu0 %1635 }
0x21a1   :  { %v1638_v19 = vmul.f32 %v3764_v34, %v1636_v35 }
0x21a3   :  { %1640 = vrot.lane.b32.xlu1 %v1638_v19, %s3850_s23 }
0x2215   :  { %v1641_v36 = vpop.permute.xlu1 %1640 }
0x2216   :  { %v1643_v25 = vadd.f32 %v1641_v36, %v1633_v1 }
0x2218   :  { %3765 = vtanh.f32 %v1643_v25 }
0x2225   :  { %v3766_v38 = vpop.eup %3765 }
0x2226   :  { %1646 = vrot.lane.b32.xlu0 %v3766_v38, %s3849_s22 }
0x2298   :  { %v1647_v39 = vpop.permute.xlu0 %1646 }
0x2299   :  { %v1649_v2 = vmul.f32 %v3764_v34, %v1647_v39 }
0x229b   :  { %1651 = vrot.lane.b32.xlu1 %v1649_v2, %s3850_s23 }
0x230d   :  { %v1652_v3 = vpop.permute.xlu1 %1651 }
0x230e   :  { %1654 = vst.msk [vmem:[#allocation3 + $0x28] sm:$0xff] %vm54_vm1, %v1652_v3  ;;  %3497 = vmatmul.mubr.msk.f32.vlgmr.msra.gmra.mxu0 %vm54_vm1, %v1652_v3 }
0x230f   :  { %3511 = vmatpush3.msra.mxu0 %v1872_v37  ;;  %3518 = vmatprep.mubr.msk.f32.mxu0 %vm54_vm1, %v1861_v41 }
0x2310   :  { %3512 = vmatprep.subr.mxu0 %v1871_v40 }
0x2311   :  { %3513 = vmatpush3.msra.mxu0 %v1871_v40 }
0x2312   :  { %3514 = vmatprep.subr.mxu0 %v1870_v4 }
0x2313   :  { %3515 = vmatpush3.msra.mxu0 %v1870_v4 }
0x2314   :  { %3516 = vmatprep.subr.mxu0 %v1869_v42 }
0x2315   :  { %3517 = vmatpush3.msra.mxu0 %v1869_v42  ;;  %v1866_v47 = vld [vmem:[#allocation3 + $0x28] sm:$0xff] }
0x2316   :  { %3519 = vmatmul.mubr.msk.f32.vlgmr.msra.gmra.mxu0 %vm54_vm1, %v1862_v43  ;;  %3552 = vmatprep.subr.mxu0 %v3847_v0 }
0x2317   :  { %3521 = vmatprep.mubr.msk.f32.mxu0 %vm54_vm1, %v1863_v44  ;;  %3553 = vmatpush3.msra.mxu0 %v4314_v62 }
0x2318   :  { %3554 = vmatprep.subr.mxu0 %v3847_v0 }
0x2319   :  { %3555 = vmatpush3.msra.mxu0 %v4320_v63 }
0x231a   :  { %3522 = vmatmul.mubr.msk.f32.gmra.mxu0 %vm54_vm1, %v1864_v45  ;;  %3556 = vmatprep.subr.mxu0 %v3847_v0 }
0x231b   :  { %3524 = vmatprep.mubr.msk.f32.mxu0 %vm54_vm1, %v1865_v46  ;;  %3557 = vmatpush3.msra.mxu0 %v4327_v5 }
0x231c   :  { %3558 = vmatprep.subr.mxu0 %v3847_v0 }
0x231d   :  { %3559 = vmatpush3.msra.mxu0 %v4334_v6 }
0x231e   :  { %3525 = vmatmul.mubr.msk.f32.gmra.mxu0 %vm54_vm1, %v1866_v47  ;;  %3574 = vmatprep.subr.mxu0 %v3847_v0 }
0x23ce   :  { %v1724_v49 = vpop.f32.mrf.mxu0 }
0x23cf   :  { %v1728_v50 = vadd.f32 %v1724_v49, %v1019_v48 }
0x23d0   :  { %v3498_v51 = vpop.f32.mrf.mxu0 }
0x23d1   :  { %3767 = vtanh.f32 %v1728_v50  ;;  %v3122_v53 = vmul.f32 -1.442695, %v1728_v50 }
0x23d3   :  { %3769 = vpow2.f32 %v3122_v53 }
0x23d6   :  { %v4366_v12 = vpop.f32.mrf.mxu0 }
0x23d7   :  { %v1976_v46 = vadd.f32 %v4366_v12, %v4371_v21 }
0x23d8   :  { %v1970_v20 = vpop.f32.mrf.mxu0 }
0x23d9   :  { %v1971_v22 = vadd.f32 %v4371_v21, %v1970_v20 }
0x23de   :  { %v3768_v52 = vpop.eup %3767 }
0x23df   :  { %1738 = vrot.lane.b32.xlu0 %v3768_v52, %s3849_s22 }
0x23e0   :  { %v3770_v54 = vpop.eup %3769 }
0x23e1   :  { %v1732_v55 = vadd.f32 1.0, %v3770_v54 }
0x23e3   :  { %3771 = vrcp.f32 %v1732_v55 }
0x23f0   :  { %v3772_v56 = vpop.eup %3771 }
0x23f1   :  { %v1736_v59 = vmul.f32 %v3772_v56, %v1643_v25 }
0x2451   :  { %v1739_v57 = vpop.permute.xlu0 %1738 }
0x2452   :  { %v1741_v58 = vmul.f32 %v3772_v56, %v1739_v57 }
0x2454   :  { %1743 = vrot.lane.b32.xlu1 %v1741_v58, %s3850_s23 }
0x24c6   :  { %v1744_v60 = vpop.permute.xlu1 %1743 }
0x24c7   :  { %v4307_v29 = vadd.f32 %v1744_v60, %v1736_v59 }
0x24c9   :  { %3773 = vtanh.f32 %v4307_v29 }
0x24d6   :  { %v3774_v61 = vpop.eup %3773 }
0x24d7   :  { %1749 = vrot.lane.b32.xlu0 %v3774_v61, %s3849_s22 }
0x2549   :  { %v1750_v7 = vpop.permute.xlu0 %1749 }
0x254a   :  { %v1752_v8 = vmul.f32 %v3772_v56, %v1750_v7 }
0x254c   :  { %1754 = vrot.lane.b32.xlu1 %v1752_v8, %s3850_s23 }
0x25be   :  { %v1755_v9 = vpop.permute.xlu1 %1754 }
0x25bf   :  { %1757 = vst.msk [vmem:[#allocation3 + $0x30] sm:$0xff] %vm54_vm1, %v1755_v9  ;;  %3508 = vmatmul.mubr.msk.f32.vlgmr.msra.gmra.mxu1 %vm54_vm1, %v1755_v9 }
0x25c0   :  { %3531 = vmatpush3.msra.mxu1 %v4314_v62  ;;  %3538 = vmatprep.mubr.msk.f32.mxu1 %vm3848_vm0, %v3847_v0 }
0x25c1   :  { %3532 = vmatprep.subr.mxu1 %v3847_v0 }
0x25c2   :  { %3533 = vmatpush3.msra.mxu1 %v4320_v63 }
0x25c3   :  { %3534 = vmatprep.subr.mxu1 %v3847_v0 }
0x25c4   :  { %3535 = vmatpush3.msra.mxu1 %v4327_v5 }
0x25c5   :  { %3536 = vmatprep.subr.mxu1 %v3847_v0 }
0x25c6   :  { %3537 = vmatpush3.msra.mxu1 %v4334_v6  ;;  %v1867_v10 = vld [vmem:[#allocation3 + $0x30] sm:$0xff] }
0x25c7   :  { %3539 = vmatmul.mubr.f32.vlgmr.msra.gmra.mxu1 %v3847_v0  ;;  %3527 = vmatprep.mubr.msk.f32.mxu0 %vm54_vm1, %v1867_v10  ;;  %v3523_v10 = vpop.f32.mrf.mxu0 }
0x25c8   :  { %3541 = vmatprep.subr.mxu1 %v3847_v0  ;;  %3549 = vmatprep.mubr.msk.f32.mxu1 %vm3848_vm0, %v3847_v0 }
0x25c9   :  { %3542 = vmatpush3.msra.mxu1 %v4314_v62 }
0x25ca   :  { %3543 = vmatprep.subr.mxu1 %v3847_v0 }
0x25cb   :  { %3544 = vmatpush3.msra.mxu1 %v4320_v63 }
0x25cc   :  { %3545 = vmatprep.subr.mxu1 %v3847_v0 }
0x25cd   :  { %3546 = vmatpush3.msra.mxu1 %v4327_v5 }
0x25ce   :  { %3547 = vmatprep.subr.mxu1 %v3847_v0 }
0x25cf   :  { %3548 = vmatpush3.msra.mxu1 %v4334_v6 }
0x25d0   :  { %3563 = vmatprep.subr.mxu1 %v3847_v0 }
0x267f   :  { %v1827_v13 = vpop.f32.mrf.mxu1 }
0x2680   :  { %v1831_v14 = vadd.f32 %v1827_v13, %v1024_v11  ;;  %v1980_v11 = vpop.f32.mrf.mxu0 }
0x2681   :  { %v3509_v15 = vpop.f32.mrf.mxu1  ;;  %v1981_v20 = vadd.f32 %v4371_v21, %v1980_v11 }
0x2682   :  { %v3124_v1 = vmul.f32 -1.442695, %v1831_v14  ;;  %v4415_v12 = vpop.f32.mrf.mxu0 }
0x2684   :  { %v4417_v13 = vpop.f32.mrf.mxu0 }
0x2687   :  { %v2088_v23 = vpop.f32.mrf.mxu1 }
0x2688   :  { %v2092_v24 = vadd.f32 %v2088_v23, %v1971_v22 }
0x2689   :  { %v3540_v16 = vpop.f32.mrf.mxu1 }
0x268a   :  { %3775 = vtanh.f32 %v2092_v24  ;;  %v3134_v28 = vmul.f32 -1.442695, %v2092_v24 }
0x268c   :  { %3777 = vpow2.f32 %v3134_v28 }
0x2697   :  { %v3776_v26 = vpop.eup %3775 }
0x2698   :  { %2102 = vrot.lane.b32.xlu0 %v3776_v26, %s3849_s22 }
0x2699   :  { %v3778_v27 = vpop.eup %3777 }
0x269a   :  { %v2096_v30 = vadd.f32 1.0, %v3778_v27 }
0x269c   :  { %3779 = vrcp.f32 %v2096_v30 }
0x26a9   :  { %v3780_v31 = vpop.eup %3779 }
0x26aa   :  { %v2100_v33 = vmul.f32 0.0, %v3780_v31 }
0x270a   :  { %v2103_v32 = vpop.permute.xlu0 %2102 }
0x270b   :  { %v2105_v17 = vmul.f32 %v3780_v31, %v2103_v32 }
0x270d   :  { %2107 = vrot.lane.b32.xlu1 %v2105_v17, %s3850_s23 }
0x277f   :  { %v2108_v18 = vpop.permute.xlu1 %2107 }
0x2780   :  { %v2110_v34 = vadd.f32 %v2108_v18, %v2100_v33 }
0x2782   :  { %3781 = vtanh.f32 %v2110_v34 }
0x2783   :  { %3783 = vtanh.f32 %v1831_v14 }
0x2784   :  { %3785 = vpow2.f32 %v3124_v1 }
0x278f   :  { %v3782_v35 = vpop.eup %3781 }
0x2790   :  { %2113 = vrot.lane.b32.xlu0 %v3782_v35, %s3849_s22  ;;  %v3784_v19 = vpop.eup %3783 }
0x2791   :  { %v3786_v36 = vpop.eup %3785 }
0x2792   :  { %v1835_v25 = vadd.f32 1.0, %v3786_v36  ;;  %v1986_v36 = vadd.f32 %v3523_v10, %v4371_v21 }
0x2794   :  { %1841 = vrot.lane.b32.xlu0 %v3784_v19, %s3849_s22  ;;  %3787 = vrcp.f32 %v1835_v25 }
0x27a1   :  { %v3788_v39 = vpop.eup %3787 }
0x27a2   :  { %v1839_v41 = vmul.f32 %v3788_v39, %v4307_v29 }
0x2802   :  { %v2114_v37 = vpop.permute.xlu0 %2113 }
0x2803   :  { %v2116_v38 = vmul.f32 %v3780_v31, %v2114_v37 }
0x2805   :  { %2119 = vrot.lane.b32.xlu1 %v2116_v38, %s3850_s23 }
0x2806   :  { %v1842_v2 = vpop.permute.xlu0 %1841 }
0x2807   :  { %v1844_v3 = vmul.f32 %v3788_v39, %v1842_v2 }
0x2809   :  { %1846 = vrot.lane.b32.xlu0 %v1844_v3, %s3850_s23 }
0x2877   :  { %v2120_v40 = vpop.permute.xlu1 %2119 }
0x2878   :  { %3550 = vmatmul.mubr.msk.f32.vlgmr.msra.gmra.mxu1 %vm54_vm1, %v2120_v40 }
0x2879   :  { %3564 = vmatpush3.msra.mxu1 %v4314_v62  ;;  %3571 = vmatprep.mubr.msk.f32.mxu1 %vm3848_vm0, %v3847_v0 }
0x287a   :  { %3565 = vmatprep.subr.mxu1 %v3847_v0 }
0x287b   :  { %v1847_v4 = vpop.permute.xlu0 %1846  ;;  %3566 = vmatpush3.msra.mxu1 %v4320_v63 }
0x287c   :  { %v1849_v42 = vadd.f32 %v1847_v4, %v1839_v41  ;;  %3567 = vmatprep.subr.mxu1 %v3847_v0 }
0x287d   :  { %3568 = vmatpush3.msra.mxu1 %v4327_v5 }
0x287e   :  { %3789 = vtanh.f32 %v1849_v42  ;;  %3569 = vmatprep.subr.mxu1 %v3847_v0 }
0x287f   :  { %3570 = vmatpush3.msra.mxu1 %v4334_v6 }
0x2880   :  { %3585 = vmatprep.subr.mxu1 %v3847_v0 }
0x288b   :  { %v3790_v43 = vpop.eup %3789 }
0x288c   :  { %1852 = vrot.lane.b32.xlu0 %v3790_v43, %s3849_s22 }
0x28fe   :  { %v1853_v44 = vpop.permute.xlu0 %1852 }
0x28ff   :  { %v1855_v45 = vmul.f32 %v3788_v39, %v1853_v44 }
0x2901   :  { %1857 = vrot.lane.b32.xlu0 %v1855_v45, %s3850_s23 }
0x2938   :  { %v2189_v47 = vpop.f32.mrf.mxu1 }
0x2939   :  { %v2193_v48 = vadd.f32 %v2189_v47, %v1976_v46 }
0x293a   :  { %v3551_v49 = vpop.f32.mrf.mxu1 }
0x293b   :  { %3791 = vtanh.f32 %v2193_v48  ;;  %v3136_v53 = vmul.f32 -1.442695, %v2193_v48 }
0x293d   :  { %3793 = vpow2.f32 %v3136_v53 }
0x2948   :  { %v3792_v50 = vpop.eup %3791 }
0x2949   :  { %2203 = vrot.lane.b32.xlu1 %v3792_v50, %s3849_s22  ;;  %v1991_v50 = vadd.f32 %v4371_v21, %v4417_v13 }
0x294a   :  { %v3794_v54 = vpop.eup %3793 }
0x294b   :  { %v2197_v55 = vadd.f32 1.0, %v3794_v54 }
0x294d   :  { %3795 = vrcp.f32 %v2197_v55 }
0x295a   :  { %v3796_v56 = vpop.eup %3795 }
0x295b   :  { %v2201_v59 = vmul.f32 %v3796_v56, %v2110_v34 }
0x2973   :  { %v1858_v51 = vpop.permute.xlu0 %1857 }
0x2974   :  { %1860 = vst.msk [vmem:[#allocation3 + $0x38] sm:$0xff] %vm54_vm1, %v1858_v51 }
0x297b   :  { %v1868_v52 = vld [vmem:[#allocation3 + $0x38] sm:$0xff] }
0x297c   :  { %3528 = vmatmul.mubr.msk.f32.gmra.mxu0 %vm54_vm1, %v1868_v52 }
0x297d   :  { %3560 = vmatprep.mubr.msk.f32.mxu0 %vm3848_vm0, %v3847_v0 }
0x29bb   :  { %v2204_v57 = vpop.permute.xlu1 %2203 }
0x29bc   :  { %v2206_v58 = vmul.f32 %v3796_v56, %v2204_v57 }
0x29be   :  { %2208 = vrot.lane.b32.xlu1 %v2206_v58, %s3850_s23 }
0x2a30   :  { %v2209_v60 = vpop.permute.xlu1 %2208 }
0x2a31   :  { %v2211_v29 = vadd.f32 %v2209_v60, %v2201_v59 }
0x2a33   :  { %3797 = vtanh.f32 %v2211_v29 }
0x2a3c   :  { %v4419_v14 = vpop.f32.mrf.mxu0 }
0x2a3e   :  { %v4421_v15 = vpop.f32.mrf.mxu0 }
0x2a40   :  { %v3798_v61 = vpop.eup %3797 }
0x2a41   :  { %2214 = vrot.lane.b32.xlu1 %v3798_v61, %s3849_s22 }
0x2ab3   :  { %v2215_v7 = vpop.permute.xlu1 %2214 }
0x2ab4   :  { %v2217_v8 = vmul.f32 %v3796_v56, %v2215_v7 }
0x2ab6   :  { %2220 = vrot.lane.b32.xlu1 %v2217_v8, %s3850_s23 }
0x2b28   :  { %v2221_v9 = vpop.permute.xlu1 %2220 }
0x2b29   :  { %3561 = vmatmul.mubr.msk.f32.vlgmr.msra.gmra.mxu0 %vm54_vm1, %v2221_v9 }
0x2b2a   :  { %3575 = vmatpush3.msra.mxu0 %v4314_v62  ;;  %3582 = vmatprep.mubr.msk.f32.mxu0 %vm3848_vm0, %v3847_v0 }
0x2b2b   :  { %3576 = vmatprep.subr.mxu0 %v3847_v0 }
0x2b2c   :  { %3577 = vmatpush3.msra.mxu0 %v4320_v63 }
0x2b2d   :  { %3578 = vmatprep.subr.mxu0 %v3847_v0 }
0x2b2e   :  { %3579 = vmatpush3.msra.mxu0 %v4327_v5 }
0x2b2f   :  { %3580 = vmatprep.subr.mxu0 %v3847_v0 }
0x2b30   :  { %3581 = vmatpush3.msra.mxu0 %v4334_v6 }
0x2b31   :  { %3596 = vmatprep.subr.mxu0 %v3847_v0 }
0x2be9   :  { %v2290_v22 = vpop.f32.mrf.mxu0 }
0x2bea   :  { %v2294_v23 = vadd.f32 %v2290_v22, %v1981_v20 }
0x2beb   :  { %v3562_v24 = vpop.f32.mrf.mxu0 }
0x2bec   :  { %3799 = vtanh.f32 %v2294_v23  ;;  %v3138_v26 = vmul.f32 -1.442695, %v2294_v23 }
0x2bee   :  { %3801 = vpow2.f32 %v3138_v26 }
0x2bf9   :  { %v3800_v16 = vpop.eup %3799 }
0x2bfa   :  { %2304 = vrot.lane.b32.xlu0 %v3800_v16, %s3849_s22 }
0x2bfb   :  { %v3802_v28 = vpop.eup %3801 }
0x2bfc   :  { %v2298_v27 = vadd.f32 1.0, %v3802_v28 }
0x2bfe   :  { %3803 = vrcp.f32 %v2298_v27 }
0x2c0b   :  { %v3804_v30 = vpop.eup %3803 }
0x2c0c   :  { %v2302_v17 = vmul.f32 %v3804_v30, %v2211_v29 }
0x2c6c   :  { %v2305_v31 = vpop.permute.xlu0 %2304 }
0x2c6d   :  { %v2307_v32 = vmul.f32 %v3804_v30, %v2305_v31 }
0x2c6f   :  { %2309 = vrot.lane.b32.xlu1 %v2307_v32, %s3850_s23 }
0x2ce1   :  { %v2310_v33 = vpop.permute.xlu1 %2309 }
0x2ce2   :  { %v2312_v18 = vadd.f32 %v2310_v33, %v2302_v17  ;;  %v2001_v33 = vadd.f32 %v4371_v21, %v4421_v15 }
0x2ce4   :  { %3805 = vtanh.f32 %v2312_v18 }
0x2cf1   :  { %v3806_v34 = vpop.eup %3805 }
0x2cf2   :  { %2315 = vrot.lane.b32.xlu0 %v3806_v34, %s3849_s22 }
0x2d64   :  { %v2316_v35 = vpop.permute.xlu0 %2315 }
0x2d65   :  { %v2318_v19 = vmul.f32 %v3804_v30, %v2316_v35 }
0x2d67   :  { %2321 = vrot.lane.b32.xlu1 %v2318_v19, %s3850_s23 }
0x2dd9   :  { %v2322_v1 = vpop.permute.xlu1 %2321 }
0x2dda   :  { %3572 = vmatmul.mubr.msk.f32.vlgmr.msra.gmra.mxu1 %vm54_vm1, %v2322_v1 }
0x2ddb   :  { %3586 = vmatpush3.msra.mxu1 %v4314_v62  ;;  %3593 = vmatprep.mubr.msk.f32.mxu1 %vm3848_vm0, %v3847_v0 }
0x2ddc   :  { %3587 = vmatprep.subr.mxu1 %v3847_v0 }
0x2ddd   :  { %3588 = vmatpush3.msra.mxu1 %v4320_v63 }
0x2dde   :  { %3589 = vmatprep.subr.mxu1 %v3847_v0 }
0x2ddf   :  { %3590 = vmatpush3.msra.mxu1 %v4327_v5 }
0x2de0   :  { %3591 = vmatprep.subr.mxu1 %v3847_v0 }
0x2de1   :  { %3592 = vmatpush3.msra.mxu1 %v4334_v6 }
0x2de2   :  { %3607 = vmatprep.subr.mxu1 %v3847_v0 }
0x2e9a   :  { %v2391_v25 = vpop.f32.mrf.mxu1 }
0x2e9b   :  { %v2395_v37 = vadd.f32 %v2391_v25, %v1986_v36 }
0x2e9c   :  { %v3573_v38 = vpop.f32.mrf.mxu1 }
0x2e9d   :  { %3807 = vtanh.f32 %v2395_v37  ;;  %v3140_v2 = vmul.f32 -1.442695, %v2395_v37 }
0x2e9f   :  { %3809 = vpow2.f32 %v3140_v2 }
0x2eaa   :  { %v3808_v39 = vpop.eup %3807 }
0x2eab   :  { %2405 = vrot.lane.b32.xlu0 %v3808_v39, %s3849_s22 }
0x2eac   :  { %v3810_v3 = vpop.eup %3809 }
0x2ead   :  { %v2399_v40 = vadd.f32 1.0, %v3810_v3 }
0x2eaf   :  { %3811 = vrcp.f32 %v2399_v40 }
0x2ebc   :  { %v3812_v41 = vpop.eup %3811 }
0x2ebd   :  { %v2403_v43 = vmul.f32 %v3812_v41, %v2312_v18 }
0x2f1d   :  { %v2406_v4 = vpop.permute.xlu0 %2405 }
0x2f1e   :  { %v2408_v42 = vmul.f32 %v3812_v41, %v2406_v4 }
0x2f20   :  { %2410 = vrot.lane.b32.xlu1 %v2408_v42, %s3850_s23 }
0x2f92   :  { %v2411_v44 = vpop.permute.xlu1 %2410 }
0x2f93   :  { %v2413_v45 = vadd.f32 %v2411_v44, %v2403_v43  ;;  %v2006_v43 = vadd.f32 %v4419_v14, %v4371_v21  ;;  %v2827_v14 = vld [vmem:[%s4567_s8 + $0x18] sm:$0xff] }
0x2f95   :  { %3813 = vtanh.f32 %v2413_v45 }
0x2fa2   :  { %v3814_v46 = vpop.eup %3813 }
0x2fa3   :  { %2416 = vrot.lane.b32.xlu0 %v3814_v46, %s3849_s22 }
0x3015   :  { %v2417_v47 = vpop.permute.xlu0 %2416 }
0x3016   :  { %v2419_v48 = vmul.f32 %v3812_v41, %v2417_v47 }
0x3018   :  { %2422 = vrot.lane.b32.xlu1 %v2419_v48, %s3850_s23 }
0x308a   :  { %v2423_v49 = vpop.permute.xlu1 %2422 }
0x308b   :  { %3583 = vmatmul.mubr.msk.f32.vlgmr.msra.gmra.mxu0 %vm54_vm1, %v2423_v49 }
0x308c   :  { %3597 = vmatpush3.msra.mxu0 %v4314_v62  ;;  %3604 = vmatprep.mubr.msk.f32.mxu0 %vm3848_vm0, %v3847_v0 }
0x308d   :  { %3598 = vmatprep.subr.mxu0 %v3847_v0 }
0x308e   :  { %3599 = vmatpush3.msra.mxu0 %v4320_v63 }
0x308f   :  { %3600 = vmatprep.subr.mxu0 %v3847_v0 }
0x3090   :  { %3601 = vmatpush3.msra.mxu0 %v4327_v5 }
0x3091   :  { %3602 = vmatprep.subr.mxu0 %v3847_v0 }
0x3092   :  { %3603 = vmatpush3.msra.mxu0 %v4334_v6 }
0x3093   :  { %3618 = vmatprep.subr.mxu0 %v3847_v0 }
0x314b   :  { %v2492_v51 = vpop.f32.mrf.mxu0 }
0x314c   :  { %v2496_v52 = vadd.f32 %v2492_v51, %v1991_v50 }
0x314d   :  { %v3584_v53 = vpop.f32.mrf.mxu0 }
0x314e   :  { %3815 = vtanh.f32 %v2496_v52  ;;  %v3142_v55 = vmul.f32 -1.442695, %v2496_v52 }
0x3150   :  { %3817 = vpow2.f32 %v3142_v55 }
0x315b   :  { %v3816_v54 = vpop.eup %3815 }
0x315c   :  { %2506 = vrot.lane.b32.xlu0 %v3816_v54, %s3849_s22 }
0x315d   :  { %v3818_v56 = vpop.eup %3817 }
0x315e   :  { %v2500_v57 = vadd.f32 1.0, %v3818_v56  ;;  %v2826_v56 = vld [vmem:[%s4567_s8 + $0x10] sm:$0xff] }
0x3160   :  { %3819 = vrcp.f32 %v2500_v57  ;;  %v2825_v57 = vld [vmem:[%s4567_s8 + $0x8] sm:$0xff] }
0x316d   :  { %v3820_v58 = vpop.eup %3819 }
0x316e   :  { %v2504_v29 = vmul.f32 %v3820_v58, %v2413_v45 }
0x31ce   :  { %v2507_v59 = vpop.permute.xlu0 %2506 }
0x31cf   :  { %v2509_v60 = vmul.f32 %v3820_v58, %v2507_v59 }
0x31d1   :  { %2511 = vrot.lane.b32.xlu1 %v2509_v60, %s3850_s23  ;;  %v2914_v60 = vld [vmem:[%s4568_s10 + $0x18] sm:$0xff] }
0x3243   :  { %v2512_v61 = vpop.permute.xlu1 %2511 }
0x3244   :  { %v2514_v7 = vadd.f32 %v2512_v61, %v2504_v29 }
0x3246   :  { %3821 = vtanh.f32 %v2514_v7 }
0x3253   :  { %v3822_v8 = vpop.eup %3821 }
0x3254   :  { %2517 = vrot.lane.b32.xlu0 %v3822_v8, %s3849_s22  ;;  %v2913_v8 = vld [vmem:[%s4568_s10 + $0x10] sm:$0xff] }
0x32c6   :  { %v2518_v9 = vpop.permute.xlu0 %2517 }
0x32c7   :  { %v2520_v10 = vmul.f32 %v3820_v58, %v2518_v9  ;;  %v2824_v58 = vld [vmem:[%s4567_s8] sm:$0xff]  ;;  %v2912_v9 = vld [vmem:[%s4568_s10 + $0x8] sm:$0xff] }
0x32c9   :  { %2523 = vrot.lane.b32.xlu1 %v2520_v10, %s3850_s23  ;;  %v2911_v10 = vld [vmem:[%s4568_s10] sm:$0xff] }
0x333b   :  { %v2524_v11 = vpop.permute.xlu1 %2523 }
0x333c   :  { %3594 = vmatmul.mubr.msk.f32.vlgmr.msra.gmra.mxu1 %vm54_vm1, %v2524_v11  ;;  %v2999_v11 = vld [vmem:[%s4569_s12 + $0x18] sm:$0xff] }
0x333d   :  { %3608 = vmatpush3.msra.mxu1 %v4314_v62  ;;  %3615 = vmatprep.mubr.msk.f32.mxu1 %vm3848_vm0, %v3847_v0  ;;  %v1996_v62 = vadd.f32 %v4415_v12, %v4371_v21 }
0x333e   :  { %3609 = vmatprep.subr.mxu1 %v3847_v0 }
0x333f   :  { %3610 = vmatpush3.msra.mxu1 %v4320_v63 }
0x3340   :  { %3611 = vmatprep.subr.mxu1 %v3847_v0 }
0x3341   :  { %3612 = vmatpush3.msra.mxu1 %v4327_v5 }
0x3342   :  { %3613 = vmatprep.subr.mxu1 %v3847_v0 }
0x3343   :  { %3614 = vmatpush3.msra.mxu1 %v4334_v6 }
0x3344   :  { %3629 = vmatprep.subr.mxu1 %v3847_v0 }
0x33fc   :  { %v2593_v13 = vpop.f32.mrf.mxu1 }
0x33fd   :  { %v2597_v20 = vadd.f32 %v2593_v13, %v1996_v62  ;;  %v3149_v62 = vld [vmem:[%s4570_s9] ss:$0 sm:$0xff] }
0x33fe   :  { %v3595_v22 = vpop.f32.mrf.mxu1 }
0x33ff   :  { %3823 = vtanh.f32 %v2597_v20  ;;  %v3144_v63 = vmul.f32 -1.442695, %v2597_v20 }
0x3401   :  { %3825 = vpow2.f32 %v3144_v63  ;;  %v2998_v63 = vld [vmem:[%s4569_s12 + $0x10] sm:$0xff] }
0x340c   :  { %v3824_v23 = vpop.eup %3823 }
0x340d   :  { %2607 = vrot.lane.b32.xlu0 %v3824_v23, %s3849_s22 }
0x340e   :  { %v3826_v24 = vpop.eup %3825 }
0x340f   :  { %v2601_v5 = vadd.f32 1.0, %v3826_v24  ;;  %v2997_v24 = vld [vmem:[%s4569_s12 + $0x8] sm:$0xff] }
0x3411   :  { %3827 = vrcp.f32 %v2601_v5  ;;  %v2996_v5 = vld [vmem:[%s4569_s12] sm:$0xff] }
0x341e   :  { %v3828_v16 = vpop.eup %3827 }
0x341f   :  { %v2605_v28 = vmul.f32 %v3828_v16, %v2514_v7 }
0x347f   :  { %v2608_v26 = vpop.permute.xlu0 %2607 }
0x3480   :  { %v2610_v6 = vmul.f32 %v3828_v16, %v2608_v26  ;;  %v3151_v26 = vld [vmem:[%s4572_s11] ss:$0 sm:$0xff] }
0x3482   :  { %2612 = vrot.lane.b32.xlu1 %v2610_v6, %s3850_s23 }
0x34f4   :  { %v2613_v27 = vpop.permute.xlu1 %2612 }
0x34f5   :  { %v2615_v12 = vadd.f32 %v2613_v27, %v2605_v28 }
0x34f7   :  { %3829 = vtanh.f32 %v2615_v12 }
0x3504   :  { %v3830_v30 = vpop.eup %3829 }
0x3505   :  { %2618 = vrot.lane.b32.xlu0 %v3830_v30, %s3849_s22 }
0x3577   :  { %v2619_v31 = vpop.permute.xlu0 %2618 }
0x3578   :  { %v2621_v32 = vmul.f32 %v3828_v16, %v2619_v31  ;;  %v19_v16 = vstv %s4571_s13 }
0x3579   :  { %20 = vst [vmem:[#allocation4] sm:$0x1] %v19_v16 }
0x357a   :  { %2624 = vrot.lane.b32.xlu1 %v2621_v32, %s3850_s23 }
0x35ec   :  { %v2625_v17 = vpop.permute.xlu1 %2624 }
0x35ed   :  { %3605 = vmatmul.mubr.msk.f32.vlgmr.msra.gmra.mxu0 %vm54_vm1, %v2625_v17 }
0x35ee   :  { %3626 = vmatprep.mubr.msk.f32.mxu0 %vm3848_vm0, %v3847_v0  ;;  %3619 = vmatpush3.msra.mxu0 %v2827_v14 }
0x35ef   :  { %3620 = vmatprep.subr.mxu0 %v3847_v0 }
0x35f0   :  { %3621 = vmatpush3.msra.mxu0 %v2826_v56 }
0x35f1   :  { %3622 = vmatprep.subr.mxu0 %v3847_v0 }
0x35f2   :  { %3623 = vmatpush3.msra.mxu0 %v2825_v57 }
0x35f3   :  { %3624 = vmatprep.subr.mxu0 %v3847_v0 }
0x35f4   :  { %3625 = vmatpush3.msra.mxu0 %v2824_v58 }
0x35f5   :  { %3640 = vmatprep.subr.mxu0 %v3847_v0 }
0x36ad   :  { %v2694_v18 = vpop.f32.mrf.mxu0 }
0x36ae   :  { %v2698_v34 = vadd.f32 %v2694_v18, %v2001_v33 }
0x36af   :  { %v3606_v35 = vpop.f32.mrf.mxu0 }
0x36b0   :  { %3831 = vtanh.f32 %v2698_v34  ;;  %v3146_v1 = vmul.f32 -1.442695, %v2698_v34 }
0x36b2   :  { %3833 = vpow2.f32 %v3146_v1 }
0x36bd   :  { %v3832_v19 = vpop.eup %3831 }
0x36be   :  { %2708 = vrot.lane.b32.xlu0 %v3832_v19, %s3849_s22 }
0x36bf   :  { %v3834_v36 = vpop.eup %3833 }
0x36c0   :  { %v2702_v25 = vadd.f32 1.0, %v3834_v36 }
0x36c2   :  { %3835 = vrcp.f32 %v2702_v25 }
0x36cf   :  { %v3836_v37 = vpop.eup %3835 }
0x36d0   :  { %v2706_v2 = vmul.f32 %v3836_v37, %v2615_v12 }
0x3730   :  { %v2709_v38 = vpop.permute.xlu0 %2708 }
0x3731   :  { %v2711_v39 = vmul.f32 %v3836_v37, %v2709_v38 }
0x3733   :  { %2713 = vrot.lane.b32.xlu1 %v2711_v39, %s3850_s23 }
0x37a5   :  { %v2714_v3 = vpop.permute.xlu1 %2713 }
0x37a6   :  { %v2716_v15 = vadd.f32 %v2714_v3, %v2706_v2 }
0x37a8   :  { %3837 = vtanh.f32 %v2716_v15 }
0x37b5   :  { %v3838_v40 = vpop.eup %3837 }
0x37b6   :  { %2719 = vrot.lane.b32.xlu0 %v3838_v40, %s3849_s22 }
0x3828   :  { %v2720_v41 = vpop.permute.xlu0 %2719 }
0x3829   :  { %v2722_v4 = vmul.f32 %v3836_v37, %v2720_v41 }
0x382b   :  { %2725 = vrot.lane.b32.xlu1 %v2722_v4, %s3850_s23 }
0x389d   :  { %v2726_v42 = vpop.permute.xlu1 %2725 }
0x389e   :  { %3616 = vmatmul.mubr.msk.f32.vlgmr.msra.gmra.mxu1 %vm54_vm1, %v2726_v42 }
0x389f   :  { %3637 = vmatprep.mubr.msk.f32.mxu1 %vm3848_vm0, %v3847_v0  ;;  %3630 = vmatpush3.msra.mxu1 %v2914_v60 }
0x38a0   :  { %3631 = vmatprep.subr.mxu1 %v3847_v0 }
0x38a1   :  { %3632 = vmatpush3.msra.mxu1 %v2913_v8 }
0x38a2   :  { %3633 = vmatprep.subr.mxu1 %v3847_v0 }
0x38a3   :  { %3634 = vmatpush3.msra.mxu1 %v2912_v9 }
0x38a4   :  { %3635 = vmatprep.subr.mxu1 %v3847_v0 }
0x38a5   :  { %3636 = vmatpush3.msra.mxu1 %v2911_v10 }
0x395e   :  { %v2795_v44 = vpop.f32.mrf.mxu1 }
0x395f   :  { %v2799_v45 = vadd.f32 %v2795_v44, %v2006_v43 }
0x3960   :  { %v3617_v46 = vpop.f32.mrf.mxu1 }
0x3961   :  { %3839 = vtanh.f32 %v2799_v45  ;;  %v3148_v48 = vmul.f32 -1.442695, %v2799_v45 }
0x3963   :  { %3841 = vpow2.f32 %v3148_v48 }
0x396e   :  { %v3840_v47 = vpop.eup %3839 }
0x396f   :  { %2809 = vrot.lane.b32.xlu0 %v3840_v47, %s3849_s22 }
0x3970   :  { %v3842_v49 = vpop.eup %3841 }
0x3971   :  { %v2803_v50 = vadd.f32 1.0, %v3842_v49 }
0x3973   :  { %3843 = vrcp.f32 %v2803_v50 }
0x3980   :  { %v3844_v51 = vpop.eup %3843 }
0x3981   :  { %v2807_v54 = vmul.f32 %v3844_v51, %v2716_v15 }
0x39e1   :  { %v2810_v52 = vpop.permute.xlu0 %2809 }
0x39e2   :  { %v2812_v53 = vmul.f32 %v3844_v51, %v2810_v52 }
0x39e4   :  { %2814 = vrot.lane.b32.xlu1 %v2812_v53, %s3850_s23 }
0x3a56   :  { %v2815_v55 = vpop.permute.xlu1 %2814 }
0x3a57   :  { %v2817_v21 = vadd.f32 %v2815_v55, %v2807_v54 }
0x3a59   :  { %3845 = vtanh.f32 %v2817_v21 }
0x3a66   :  { %v3846_v59 = vpop.eup %3845 }
0x3a67   :  { %2820 = vrot.lane.b32.xlu0 %v3846_v59, %s3849_s22 }
0x3ad9   :  { %v2821_v29 = vpop.permute.xlu0 %2820 }
0x3ada   :  { %v2823_v61 = vmul.f32 %v3844_v51, %v2821_v29 }
0x3adc   :  { %2836 = vrot.lane.b32.xlu1 %v2823_v61, %s3850_s23 }
0x3b4e   :  { %v2837_v7 = vpop.permute.xlu1 %2836 }
0x3b4f   :  { %3627 = vmatmul.mubr.msk.f32.vlgmr.msra.gmra.mxu0 %vm54_vm1, %v2837_v7 }
0x3b50   :  { %3648 = vmatprep.mubr.msk.f32.mxu0 %vm3848_vm0, %v3847_v0  ;;  %3641 = vmatpush3.msra.mxu0 %v2999_v11 }
0x3b51   :  { %3642 = vmatprep.subr.mxu0 %v3847_v0 }
0x3b52   :  { %3643 = vmatpush3.msra.mxu0 %v2998_v63 }
0x3b53   :  { %3644 = vmatprep.subr.mxu0 %v3847_v0 }
0x3b54   :  { %3645 = vmatpush3.msra.mxu0 %v2997_v24 }
0x3b55   :  { %3646 = vmatprep.subr.mxu0 %v3847_v0  ;;  %v3153_v0 = vld [vmem:[#allocation4] ss:$0 sm:$0xff] }
0x3b56   :  { %3647 = vmatpush3.msra.mxu0 %v2996_v5 }
0x3c0f   :  { %v2906_v13 = vpop.f32.mrf.mxu0 }
0x3c10   :  { %v2907_v20 = vadd.f32 %v3149_v62, %v2906_v13 }
0x3c11   :  { %v3628_v22 = vpop.f32.mrf.mxu0 }
0x3c12   :  { %v2910_v23 = vmax.f32 %v2907_v20, 0.0 }
0x3c14   :  { %3638 = vmatmul.mubr.msk.f32.vlgmr.msra.gmra.mxu1 %vm54_vm1, %v2910_v23 }
0x3cd4   :  { %v2991_v6 = vpop.f32.mrf.mxu1 }
0x3cd5   :  { %v2992_v28 = vadd.f32 %v3151_v26, %v2991_v6 }
0x3cd6   :  { %v3639_v27 = vpop.f32.mrf.mxu1 }
0x3cd7   :  { %v2995_v12 = vmax.f32 %v2992_v28, 0.0 }
0x3cd9   :  { %3649 = vmatmul.mubr.msk.f32.vlgmr.msra.gmra.mxu0 %vm54_vm1, %v2995_v12 }
0x3d99   :  { %v3076_v30 = vpop.f32.mrf.mxu0 }
0x3d9a   :  { %v3077_v31 = vadd.f32 %v3153_v0, %v3076_v30 }
0x3d9b   :  { %v3650_v32 = vpop.f32.mrf.mxu0 }
0x3d9c   :  { %3081 = vst.msk [vmem:[%s4573_s14] sm:$0xff] %vm3080_vm2, %v3077_v31 }

</bundles_post_ra>
